<compile_context>
chip_gen: v7x
topology: tpu7x:2x2x1
jax: 0.10.0
libtpu: 0.0.40
codegen_flags: <defaults>
</compile_context>

<pallas_src>
import functools

import jax
import jax.numpy as jnp
from jax.experimental import pallas as pl
from jax.experimental.pallas import tpu as pltpu


# ----------------------------------------------------------------------------
# Fused Pallas kernel (one batch tile of Bt rows per grid step)
# ----------------------------------------------------------------------------
def _make_textrnn_kernel(*, T, Bt, H, num_layers):
    """Ref order seen by the kernel:
      x_ref                                  [T*Bt, E]
      per layer: wih [D_in, 16H], whh [2H, 8H], bias [1, 16H]
      fc_w [2H, C_pad], fc_b [1, C_pad]
      out_ref [Bt, C_pad]
      scratch: gx [T*Bt, 16H]  (+ two [T*Bt, 2H] ping-pong bufs if L > 1)

    Gate columns are interleaved [i_f,i_b,f_f,f_b,g_f,g_b,o_f,o_b] (H wide
    each); i/f/o columns were pre-scaled by 0.5, so sigmoid(x) = 0.5*tanh+0.5.
    """
    NG = 8 * H  # fused (both-direction) gate width

    def kernel(*args):
        x_ref = args[0]
        layer_refs = args[1:1 + 3 * num_layers]
        fc_w_ref = args[1 + 3 * num_layers]
        fc_b_ref = args[2 + 3 * num_layers]
        out_ref = args[3 + 3 * num_layers]
        scratch = args[4 + 3 * num_layers:]
        gx_ref = scratch[0]
        hseq = scratch[1:]          # ping-pong inter-layer activation buffers

        h_sum = None
        for layer in range(num_layers):
            wih_ref = layer_refs[3 * layer + 0]
            whh_ref = layer_refs[3 * layer + 1]
            b_ref = layer_refs[3 * layer + 2]

            # Hoisted input projection: one MXU matmul over all T steps, both
            # directions (fwd gates in cols 0:8H, bwd in 8H:16H), bias folded
            # in.  Result lives in VMEM scratch, not in vregs.
            if layer == 0:
                inp = x_ref[...]                      # [T*Bt, E]
            else:
                inp = hseq[(layer - 1) % 2][...]      # [T*Bt, 2H]
            gx_ref[...] = (jnp.dot(inp, wih_ref[...],
                                   preferred_element_type=jnp.float32)
                           + b_ref[...])

            whh = whh_ref[...]                        # [2H, 8H] block-diagonal
            is_last = layer == num_layers - 1
            store = None if is_last else hseq[layer % 2]

            # Interleaved recurrence: step s = fwd time s + bwd time T-1-s.
            h = jnp.zeros((Bt, 2 * H), jnp.float32)   # [h_fwd | h_bwd]
            c = jnp.zeros((Bt, 2 * H), jnp.float32)   # [c_fwd | c_bwd]
            if is_last:
                h_sum = jnp.zeros((Bt, 2 * H), jnp.float32)
            for s in range(T):                        # unrolled: T is small
                tf = s
                tb = T - 1 - s
                gh = jnp.dot(h, whh, preferred_element_type=jnp.float32)
                g = (gx_ref[tf * Bt:(tf + 1) * Bt, 0:NG]
                     + gx_ref[tb * Bt:(tb + 1) * Bt, NG:2 * NG]
                     + gh)
                tg = jnp.tanh(g)          # single EUP pass, all gates / dirs
                i_g = 0.5 * tg[:, 0:2 * H] + 0.5        # sigmoid(i), both dirs
                f_g = 0.5 * tg[:, 2 * H:4 * H] + 0.5    # sigmoid(f)
                g_g = tg[:, 4 * H:6 * H]                # tanh(g)  (unscaled)
                o_g = 0.5 * tg[:, 6 * H:8 * H] + 0.5    # sigmoid(o)
                c = f_g * c + i_g * g_g
                h = o_g * jnp.tanh(c)
                if store is not None:
                    store[tf * Bt:(tf + 1) * Bt, 0:H] = h[:, 0:H]
                    store[tb * Bt:(tb + 1) * Bt, H:2 * H] = h[:, H:2 * H]
                if is_last:
                    h_sum = h_sum + h

        # Mean over time + final linear layer (lane-dense padded output slab).
        mean_h = h_sum * jnp.float32(1.0 / T)         # [Bt, 2H] = [mean_f|mean_b]
        out_ref[...] = (jnp.dot(mean_h, fc_w_ref[...],
                                preferred_element_type=jnp.float32)
                        + fc_b_ref[...])

    return kernel


# ----------------------------------------------------------------------------
# Wrapper-side weight preparation (exact transforms, done once per call)
# ----------------------------------------------------------------------------
def _interleave_gates(w4, direction, H):
    """[D, 4H] (gates i,f,g,o of one direction) -> [D, 8H] interleaved
    [i_f,i_b,f_f,f_b,g_f,g_b,o_f,o_b]; zeros in the other direction's slots."""
    D = w4.shape[0]
    out = jnp.zeros((D, 8 * H), w4.dtype)
    for gate in range(4):
        col = (2 * gate + direction) * H
        out = out.at[:, col:col + H].set(w4[:, gate * H:(gate + 1) * H])
    return out


def _gate_scale(H):
    # i/f/o columns pre-scaled by 0.5 (sigmoid-via-tanh trick); g unscaled.
    return jnp.concatenate([jnp.full((4 * H,), 0.5, jnp.float32),
                            jnp.ones((2 * H,), jnp.float32),
                            jnp.full((2 * H,), 0.5, jnp.float32)])


def text_rnn_forward(token_ids, params, *, hidden, num_layers):
    """token_ids: [B, T] int32 (this is x[0] in the PyTorch forward)."""
    B, T = token_ids.shape
    E = params["embedding"].shape[1]
    C = params["fc_w"].shape[1]
    H = hidden

    B_pad = ((B + 7) // 8) * 8                     # sublane multiple
    C_pad = ((C + 127) // 128) * 128               # lane-dense FC output slab
    B_tile = next(t for t in (64, 32, 16, 8) if B_pad % t == 0)
    G = B_pad // B_tile                            # batch-parallel grid size

    # Embedding lookup (plain-JAX gather), batch pad, group/time-major layout:
    # within group g the row index is t*B_tile + b_local.
    # TODO(synk): at large vocab/T/B fuse the gather into the kernel via
    # PrefetchScalarGridSpec instead of materializing [B, T, E] in HBM.
    emb = params["embedding"][token_ids]                        # [B, T, E]
    emb = jnp.pad(emb, ((0, B_pad - B), (0, 0), (0, 0)))
    x2d = (emb.reshape(G, B_tile, T, E)
              .transpose(0, 2, 1, 3)                            # [G, T, Bt, E]
              .reshape(G * T * B_tile, E))

    scale = _gate_scale(H)                                      # [8H]
    weight_args = []
    layer_specs = []
    for layer in range(num_layers):
        lp = params["lstm"][layer]
        d_in = E if layer == 0 else 2 * H
        wih_f = _interleave_gates(lp["wih_f"], 0, H) * scale[None, :]
        wih_b = _interleave_gates(lp["wih_b"], 1, H) * scale[None, :]
        wih = jnp.concatenate([wih_f, wih_b], axis=1)           # [D_in, 16H]
        whh = jnp.concatenate(
            [_interleave_gates(lp["whh_f"], 0, H),
             _interleave_gates(lp["whh_b"], 1, H)],
            axis=0) * scale[None, :]                            # [2H, 8H]
        bias = (_interleave_gates(lp["b_f"], 0, H)
                + _interleave_gates(lp["b_b"], 1, H)) * scale[None, :]
        bias16 = jnp.concatenate([bias, jnp.zeros_like(bias)], axis=1)
        weight_args += [wih, whh, bias16]
        layer_specs += [
            pl.BlockSpec((d_in, 16 * H), lambda g: (0, 0)),
            pl.BlockSpec((2 * H, 8 * H), lambda g: (0, 0)),
            pl.BlockSpec((1, 16 * H), lambda g: (0, 0)),
        ]

    fc_w = jnp.pad(params["fc_w"], ((0, 0), (0, C_pad - C)))
    fc_b = jnp.pad(params["fc_b"], ((0, 0), (0, C_pad - C)))

    in_specs = ([pl.BlockSpec((T * B_tile, E), lambda g: (g, 0))]
                + layer_specs
                + [pl.BlockSpec((2 * H, C_pad), lambda g: (0, 0)),
                   pl.BlockSpec((1, C_pad), lambda g: (0, 0))])
    out_specs = pl.BlockSpec((B_tile, C_pad), lambda g: (g, 0))

    scratch_shapes = [pltpu.VMEM((T * B_tile, 16 * H), jnp.float32)]
    if num_layers > 1:
        scratch_shapes += [pltpu.VMEM((T * B_tile, 2 * H), jnp.float32)] * 2

    kernel = _make_textrnn_kernel(T=T, Bt=B_tile, H=H, num_layers=num_layers)

    # Cheap scheduler hints.
    flops = 0
    for layer in range(num_layers):
        d_in = E if layer == 0 else 2 * H
        flops += 2 * T * B_pad * d_in * 16 * H          # hoisted projections
        flops += 2 * T * B_pad * 2 * H * 8 * H          # fused recurrent matmuls
    flops += 2 * B_pad * 2 * H * C_pad
    transcendentals = num_layers * T * B_pad * 10 * H
    bytes_accessed = 4 * (x2d.size + sum(int(w.size) for w in weight_args)
                          + fc_w.size + fc_b.size + B_pad * C_pad)
    cost = pl.CostEstimate(flops=int(flops),
                           transcendentals=int(transcendentals),
                           bytes_accessed=int(bytes_accessed))

    out_pad = pl.pallas_call(
        kernel,
        out_shape=jax.ShapeDtypeStruct((B_pad, C_pad), jnp.float32),
        grid=(G,),
        in_specs=in_specs,
        out_specs=out_specs,
        scratch_shapes=scratch_shapes,
        compiler_params=pltpu.CompilerParams(
            dimension_semantics=("parallel",),
            vmem_limit_bytes=32 * 1024 * 1024),
        cost_estimate=cost,
    )(x2d, *weight_args, fc_w, fc_b)

    return out_pad[:B, :C]


# ----------------------------------------------------------------------------
# Pure-JAX reference (same math, raw parameters) for a sanity check
# ----------------------------------------------------------------------------
def text_rnn_reference(token_ids, params, *, hidden, num_layers):
    emb = params["embedding"][token_ids]        # [B, T, E]
    x = jnp.transpose(emb, (1, 0, 2))           # [T, B, E]
    T, B, _ = x.shape
    H = hidden
    inp = x
    for layer in range(num_layers):
        lp = params["lstm"][layer]
        outs = []
        for tag, reverse in (("f", False), ("b", True)):
            wih, whh, b = lp[f"wih_{tag}"], lp[f"whh_{tag}"], lp[f"b_{tag}"]
            h = jnp.zeros((B, H), jnp.float32)
            c = jnp.zeros((B, H), jnp.float32)
            hs = [None] * T
            order = range(T - 1, -1, -1) if reverse else range(T)
            for t in order:
                g = inp[t] @ wih + h @ whh + b
                i_g = jax.nn.sigmoid(g[:, :H])
                f_g = jax.nn.sigmoid(g[:, H:2 * H])
                g_g = jnp.tanh(g[:, 2 * H:3 * H])
                o_g = jax.nn.sigmoid(g[:, 3 * H:])
                c = f_g * c + i_g * g_g
                h = o_g * jnp.tanh(c)
                hs[t] = h
            outs.append(jnp.stack(hs, axis=0))
        inp = jnp.concatenate(outs, axis=-1)
    m = jnp.mean(inp, axis=0)
    return m @ params["fc_w"] + params["fc_b"]


# ----------------------------------------------------------------------------
# Deterministic parameter construction (shapes follow nn.Module.__init__)
# ----------------------------------------------------------------------------
def init_params(key, *, vocab, embed, hidden, num_layers, num_classes):
    k = 1.0 / jnp.sqrt(jnp.float32(hidden))

    def uni(key, shape):
        return jax.random.uniform(key, shape, jnp.float32, minval=-k, maxval=k)

    keys = jax.random.split(key, 2 + num_layers * 8 + 2)
    it = iter(keys)

    params = {}
    # "pretrained" embedding table (synthetic, deterministic)
    params["embedding"] = jax.random.normal(next(it), (vocab, embed), jnp.float32)

    lstm_params = []
    for layer in range(num_layers):
        d_in = embed if layer == 0 else 2 * hidden
        lp = {}
        for tag in ("f", "b"):
            wih = uni(next(it), (d_in, 4 * hidden))     # transposed vs PyTorch
            whh = uni(next(it), (hidden, 4 * hidden))
            b_ih = uni(next(it), (1, 4 * hidden))
            b_hh = uni(next(it), (1, 4 * hidden))
            lp[f"wih_{tag}"] = wih
            lp[f"whh_{tag}"] = whh
            lp[f"b_{tag}"] = b_ih + b_hh                # combined bias
        lstm_params.append(lp)
    params["lstm"] = lstm_params

    params["fc_w"] = uni(next(it), (2 * hidden, num_classes))
    params["fc_b"] = uni(next(it), (1, num_classes))
    return params


# ----------------------------------------------------------------------------
if __name__ == "__main__":
    VOCAB = 50
    EMBED = 32
    HIDDEN = 32
    NUM_LAYERS = 2
    NUM_CLASSES = 5
    BATCH = 2
    SEQ = 8

    key = jax.random.PRNGKey(0)
    key_p, key_x = jax.random.split(key)

    params = init_params(key_p, vocab=VOCAB, embed=EMBED, hidden=HIDDEN,
                         num_layers=NUM_LAYERS, num_classes=NUM_CLASSES)

    # x in the PyTorch module is a tuple; x[0] holds the token ids [B, T].
    token_ids = jax.random.randint(key_x, (BATCH, SEQ), 0, VOCAB, dtype=jnp.int32)

    fwd = jax.jit(functools.partial(text_rnn_forward,
                                    hidden=HIDDEN, num_layers=NUM_LAYERS))
    out = fwd(token_ids, params)
    out = jax.block_until_ready(out)

    assert out.shape == (BATCH, NUM_CLASSES), out.shape
    assert bool(jnp.all(jnp.isfinite(out)))

    ref = text_rnn_reference(token_ids, params,
                             hidden=HIDDEN, num_layers=NUM_LAYERS)
    ref = jax.block_until_ready(ref)
    max_diff = float(jnp.max(jnp.abs(out - ref)))
    assert max_diff < 1e-2, f"mismatch vs reference: {max_diff}"

    print("KERNEL_OK")
</pallas_src>

<mosaic_0001>
module attributes {stable_mosaic.version = 11 : i64} {
  func.func @kernel(%arg0: i32, %arg1: memref<64x32xf32, #tpu.memory_space<vmem>>, %arg2: memref<32x512xf32, #tpu.memory_space<vmem>>, %arg3: memref<64x256xf32, #tpu.memory_space<vmem>>, %arg4: memref<1x512xf32, #tpu.memory_space<vmem>>, %arg5: memref<64x512xf32, #tpu.memory_space<vmem>>, %arg6: memref<64x256xf32, #tpu.memory_space<vmem>>, %arg7: memref<1x512xf32, #tpu.memory_space<vmem>>, %arg8: memref<64x128xf32, #tpu.memory_space<vmem>>, %arg9: memref<1x128xf32, #tpu.memory_space<vmem>>, %arg10: memref<8x128xf32, #tpu.memory_space<vmem>>, %arg11: memref<64x512xf32, #tpu.memory_space<vmem>>, %arg12: memref<64x64xf32, #tpu.memory_space<vmem>>, %arg13: memref<64x64xf32, #tpu.memory_space<vmem>>) attributes {dimension_semantics = [#tpu.dimension_semantics<parallel>], iteration_bounds = array<i64: 1>, scalar_prefetch = 0 : i64, scratch_operands = 3 : i64, tpu.core_type = #tpu.core_type<tc>, window_params = [{transform_indices = @transform_0, window_bounds = array<i64: 64, 32>}, {pipeline_mode = #tpu.pipeline_mode<synchronous>, transform_indices = @transform_1, window_bounds = array<i64: 32, 512>}, {pipeline_mode = #tpu.pipeline_mode<synchronous>, transform_indices = @transform_2, window_bounds = array<i64: 64, 256>}, {pipeline_mode = #tpu.pipeline_mode<synchronous>, transform_indices = @transform_3, window_bounds = array<i64: 1, 512>}, {pipeline_mode = #tpu.pipeline_mode<synchronous>, transform_indices = @transform_4, window_bounds = array<i64: 64, 512>}, {pipeline_mode = #tpu.pipeline_mode<synchronous>, transform_indices = @transform_5, window_bounds = array<i64: 64, 256>}, {pipeline_mode = #tpu.pipeline_mode<synchronous>, transform_indices = @transform_6, window_bounds = array<i64: 1, 512>}, {pipeline_mode = #tpu.pipeline_mode<synchronous>, transform_indices = @transform_7, window_bounds = array<i64: 64, 128>}, {pipeline_mode = #tpu.pipeline_mode<synchronous>, transform_indices = @transform_8, window_bounds = array<i64: 1, 128>}, {transform_indices = @transform_9, window_bounds = array<i64: 8, 128>}]} {
    %c0 = arith.constant 0 : index
    %c0_0 = arith.constant 0 : index
    %0 = vector.load %arg1[%c0, %c0_0] : memref<64x32xf32, #tpu.memory_space<vmem>>, vector<64x32xf32>
    %c0_1 = arith.constant 0 : index
    %c0_2 = arith.constant 0 : index
    %1 = vector.load %arg2[%c0_1, %c0_2] : memref<32x512xf32, #tpu.memory_space<vmem>>, vector<32x512xf32>
    %cst = arith.constant dense<0.000000e+00> : vector<64x512xf32>
    %2 = tpu.matmul %0, %1, %cst {dimension_numbers = #tpu.dot_dimension_numbers<[1], [0], [0], [1], [0, 0, 1, 1], [], []>} : vector<64x32xf32>, vector<32x512xf32>, vector<64x512xf32> -> vector<64x512xf32>
    %c0_3 = arith.constant 0 : index
    %c0_4 = arith.constant 0 : index
    %3 = vector.load %arg4[%c0_3, %c0_4] : memref<1x512xf32, #tpu.memory_space<vmem>>, vector<1x512xf32>
    %4 = vector.broadcast %3 : vector<1x512xf32> to vector<64x512xf32>
    %5 = arith.addf %2, %4 : vector<64x512xf32>
    %c0_5 = arith.constant 0 : index
    %c0_6 = arith.constant 0 : index
    %6 = vector.load %arg11[%c0_5, %c0_6] : memref<64x512xf32, #tpu.memory_space<vmem>>, vector<64x512xf32>
    tpu.vector_store %arg11[%c0_5, %c0_6], %5 {strides = array<i32>} : memref<64x512xf32, #tpu.memory_space<vmem>>, vector<64x512xf32>,
    %c0_7 = arith.constant 0 : index
    %c0_8 = arith.constant 0 : index
    %7 = vector.load %arg3[%c0_7, %c0_8] : memref<64x256xf32, #tpu.memory_space<vmem>>, vector<64x256xf32>
    %cst_9 = arith.constant 0.000000e+00 : f32
    %8 = vector.broadcast %cst_9 : f32 to vector<8x64xf32>
    %cst_10 = arith.constant 0.000000e+00 : f32
    %9 = vector.broadcast %cst_10 : f32 to vector<8x64xf32>
    %cst_11 = arith.constant dense<0.000000e+00> : vector<8x256xf32>
    %10 = tpu.matmul %8, %7, %cst_11 {dimension_numbers = #tpu.dot_dimension_numbers<[1], [0], [0], [1], [0, 0, 1, 1], [], []>} : vector<8x64xf32>, vector<64x256xf32>, vector<8x256xf32> -> vector<8x256xf32>
    %c0_12 = arith.constant 0 : index
    %c0_13 = arith.constant 0 : index
    %11 = vector.load %arg11[%c0_12, %c0_13] : memref<64x512xf32, #tpu.memory_space<vmem>>, vector<8x256xf32>
    %c56 = arith.constant 56 : index
    %c256 = arith.constant 256 : index
    %12 = vector.load %arg11[%c56, %c256] : memref<64x512xf32, #tpu.memory_space<vmem>>, vector<8x256xf32>
    %13 = arith.addf %11, %12 : vector<8x256xf32>
    %14 = arith.addf %13, %10 : vector<8x256xf32>
    %15 = math.tanh %14 : vector<8x256xf32>
    %16 = vector.extract_strided_slice %15 {offsets = [0, 0], sizes = [8, 64], strides = [1, 1]} : vector<8x256xf32> to vector<8x64xf32>
    %cst_14 = arith.constant 5.000000e-01 : f32
    %17 = vector.broadcast %cst_14 : f32 to vector<8x64xf32>
    %18 = arith.mulf %17, %16 : vector<8x64xf32>
    %cst_15 = arith.constant 5.000000e-01 : f32
    %19 = vector.broadcast %cst_15 : f32 to vector<8x64xf32>
    %20 = arith.addf %18, %19 : vector<8x64xf32>
    %21 = vector.extract_strided_slice %15 {offsets = [0, 64], sizes = [8, 64], strides = [1, 1]} : vector<8x256xf32> to vector<8x64xf32>
    %cst_16 = arith.constant 5.000000e-01 : f32
    %22 = vector.broadcast %cst_16 : f32 to vector<8x64xf32>
    %23 = arith.mulf %22, %21 : vector<8x64xf32>
    %cst_17 = arith.constant 5.000000e-01 : f32
    %24 = vector.broadcast %cst_17 : f32 to vector<8x64xf32>
    %25 = arith.addf %23, %24 : vector<8x64xf32>
    %26 = vector.extract_strided_slice %15 {offsets = [0, 128], sizes = [8, 64], strides = [1, 1]} : vector<8x256xf32> to vector<8x64xf32>
    %27 = vector.extract_strided_slice %15 {offsets = [0, 192], sizes = [8, 64], strides = [1, 1]} : vector<8x256xf32> to vector<8x64xf32>
    %cst_18 = arith.constant 5.000000e-01 : f32
    %28 = vector.broadcast %cst_18 : f32 to vector<8x64xf32>
    %29 = arith.mulf %28, %27 : vector<8x64xf32>
    %cst_19 = arith.constant 5.000000e-01 : f32
    %30 = vector.broadcast %cst_19 : f32 to vector<8x64xf32>
    %31 = arith.addf %29, %30 : vector<8x64xf32>
    %32 = arith.mulf %25, %9 : vector<8x64xf32>
    %33 = arith.mulf %20, %26 : vector<8x64xf32>
    %34 = arith.addf %32, %33 : vector<8x64xf32>
    %35 = math.tanh %34 : vector<8x64xf32>
    %36 = arith.mulf %31, %35 : vector<8x64xf32>
    %37 = vector.extract_strided_slice %36 {offsets = [0, 0], sizes = [8, 32], strides = [1, 1]} : vector<8x64xf32> to vector<8x32xf32>
    %c0_20 = arith.constant 0 : index
    %c0_21 = arith.constant 0 : index
    %38 = vector.load %arg12[%c0_20, %c0_21] : memref<64x64xf32, #tpu.memory_space<vmem>>, vector<8x32xf32>
    tpu.vector_store %arg12[%c0_20, %c0_21], %37 {strides = array<i32>} : memref<64x64xf32, #tpu.memory_space<vmem>>, vector<8x32xf32>,
    %39 = vector.extract_strided_slice %36 {offsets = [0, 32], sizes = [8, 32], strides = [1, 1]} : vector<8x64xf32> to vector<8x32xf32>
    %c56_22 = arith.constant 56 : index
    %c32 = arith.constant 32 : index
    %40 = vector.load %arg12[%c56_22, %c32] : memref<64x64xf32, #tpu.memory_space<vmem>>, vector<8x32xf32>
    tpu.vector_store %arg12[%c56_22, %c32], %39 {strides = array<i32>} : memref<64x64xf32, #tpu.memory_space<vmem>>, vector<8x32xf32>,
    %cst_23 = arith.constant dense<0.000000e+00> : vector<8x256xf32>
    %41 = tpu.matmul %36, %7, %cst_23 {dimension_numbers = #tpu.dot_dimension_numbers<[1], [0], [0], [1], [0, 0, 1, 1], [], []>} : vector<8x64xf32>, vector<64x256xf32>, vector<8x256xf32> -> vector<8x256xf32>
    %c8 = arith.constant 8 : index
    %c0_24 = arith.constant 0 : index
    %42 = vector.load %arg11[%c8, %c0_24] : memref<64x512xf32, #tpu.memory_space<vmem>>, vector<8x256xf32>
    %c48 = arith.constant 48 : index
    %c256_25 = arith.constant 256 : index
    %43 = vector.load %arg11[%c48, %c256_25] : memref<64x512xf32, #tpu.memory_space<vmem>>, vector<8x256xf32>
    %44 = arith.addf %42, %43 : vector<8x256xf32>
    %45 = arith.addf %44, %41 : vector<8x256xf32>
    %46 = math.tanh %45 : vector<8x256xf32>
    %47 = vector.extract_strided_slice %46 {offsets = [0, 0], sizes = [8, 64], strides = [1, 1]} : vector<8x256xf32> to vector<8x64xf32>
    %cst_26 = arith.constant 5.000000e-01 : f32
    %48 = vector.broadcast %cst_26 : f32 to vector<8x64xf32>
    %49 = arith.mulf %48, %47 : vector<8x64xf32>
    %cst_27 = arith.constant 5.000000e-01 : f32
    %50 = vector.broadcast %cst_27 : f32 to vector<8x64xf32>
    %51 = arith.addf %49, %50 : vector<8x64xf32>
    %52 = vector.extract_strided_slice %46 {offsets = [0, 64], sizes = [8, 64], strides = [1, 1]} : vector<8x256xf32> to vector<8x64xf32>
    %cst_28 = arith.constant 5.000000e-01 : f32
    %53 = vector.broadcast %cst_28 : f32 to vector<8x64xf32>
    %54 = arith.mulf %53, %52 : vector<8x64xf32>
    %cst_29 = arith.constant 5.000000e-01 : f32
    %55 = vector.broadcast %cst_29 : f32 to vector<8x64xf32>
    %56 = arith.addf %54, %55 : vector<8x64xf32>
    %57 = vector.extract_strided_slice %46 {offsets = [0, 128], sizes = [8, 64], strides = [1, 1]} : vector<8x256xf32> to vector<8x64xf32>
    %58 = vector.extract_strided_slice %46 {offsets = [0, 192], sizes = [8, 64], strides = [1, 1]} : vector<8x256xf32> to vector<8x64xf32>
    %cst_30 = arith.constant 5.000000e-01 : f32
    %59 = vector.broadcast %cst_30 : f32 to vector<8x64xf32>
    %60 = arith.mulf %59, %58 : vector<8x64xf32>
    %cst_31 = arith.constant 5.000000e-01 : f32
    %61 = vector.broadcast %cst_31 : f32 to vector<8x64xf32>
    %62 = arith.addf %60, %61 : vector<8x64xf32>
    %63 = arith.mulf %56, %34 : vector<8x64xf32>
    %64 = arith.mulf %51, %57 : vector<8x64xf32>
    %65 = arith.addf %63, %64 : vector<8x64xf32>
    %66 = math.tanh %65 : vector<8x64xf32>
    %67 = arith.mulf %62, %66 : vector<8x64xf32>
    %68 = vector.extract_strided_slice %67 {offsets = [0, 0], sizes = [8, 32], strides = [1, 1]} : vector<8x64xf32> to vector<8x32xf32>
    %c8_32 = arith.constant 8 : index
    %c0_33 = arith.constant 0 : index
    %69 = vector.load %arg12[%c8_32, %c0_33] : memref<64x64xf32, #tpu.memory_space<vmem>>, vector<8x32xf32>
    tpu.vector_store %arg12[%c8_32, %c0_33], %68 {strides = array<i32>} : memref<64x64xf32, #tpu.memory_space<vmem>>, vector<8x32xf32>,
    %70 = vector.extract_strided_slice %67 {offsets = [0, 32], sizes = [8, 32], strides = [1, 1]} : vector<8x64xf32> to vector<8x32xf32>
    %c48_34 = arith.constant 48 : index
    %c32_35 = arith.constant 32 : index
    %71 = vector.load %arg12[%c48_34, %c32_35] : memref<64x64xf32, #tpu.memory_space<vmem>>, vector<8x32xf32>
    tpu.vector_store %arg12[%c48_34, %c32_35], %70 {strides = array<i32>} : memref<64x64xf32, #tpu.memory_space<vmem>>, vector<8x32xf32>,
    %cst_36 = arith.constant dense<0.000000e+00> : vector<8x256xf32>
    %72 = tpu.matmul %67, %7, %cst_36 {dimension_numbers = #tpu.dot_dimension_numbers<[1], [0], [0], [1], [0, 0, 1, 1], [], []>} : vector<8x64xf32>, vector<64x256xf32>, vector<8x256xf32> -> vector<8x256xf32>
    %c16 = arith.constant 16 : index
    %c0_37 = arith.constant 0 : index
    %73 = vector.load %arg11[%c16, %c0_37] : memref<64x512xf32, #tpu.memory_space<vmem>>, vector<8x256xf32>
    %c40 = arith.constant 40 : index
    %c256_38 = arith.constant 256 : index
    %74 = vector.load %arg11[%c40, %c256_38] : memref<64x512xf32, #tpu.memory_space<vmem>>, vector<8x256xf32>
    %75 = arith.addf %73, %74 : vector<8x256xf32>
    %76 = arith.addf %75, %72 : vector<8x256xf32>
    %77 = math.tanh %76 : vector<8x256xf32>
    %78 = vector.extract_strided_slice %77 {offsets = [0, 0], sizes = [8, 64], strides = [1, 1]} : vector<8x256xf32> to vector<8x64xf32>
    %cst_39 = arith.constant 5.000000e-01 : f32
    %79 = vector.broadcast %cst_39 : f32 to vector<8x64xf32>
    %80 = arith.mulf %79, %78 : vector<8x64xf32>
    %cst_40 = arith.constant 5.000000e-01 : f32
    %81 = vector.broadcast %cst_40 : f32 to vector<8x64xf32>
    %82 = arith.addf %80, %81 : vector<8x64xf32>
    %83 = vector.extract_strided_slice %77 {offsets = [0, 64], sizes = [8, 64], strides = [1, 1]} : vector<8x256xf32> to vector<8x64xf32>
    %cst_41 = arith.constant 5.000000e-01 : f32
    %84 = vector.broadcast %cst_41 : f32 to vector<8x64xf32>
    %85 = arith.mulf %84, %83 : vector<8x64xf32>
    %cst_42 = arith.constant 5.000000e-01 : f32
    %86 = vector.broadcast %cst_42 : f32 to vector<8x64xf32>
    %87 = arith.addf %85, %86 : vector<8x64xf32>
    %88 = vector.extract_strided_slice %77 {offsets = [0, 128], sizes = [8, 64], strides = [1, 1]} : vector<8x256xf32> to vector<8x64xf32>
    %89 = vector.extract_strided_slice %77 {offsets = [0, 192], sizes = [8, 64], strides = [1, 1]} : vector<8x256xf32> to vector<8x64xf32>
    %cst_43 = arith.constant 5.000000e-01 : f32
    %90 = vector.broadcast %cst_43 : f32 to vector<8x64xf32>
    %91 = arith.mulf %90, %89 : vector<8x64xf32>
    %cst_44 = arith.constant 5.000000e-01 : f32
    %92 = vector.broadcast %cst_44 : f32 to vector<8x64xf32>
    %93 = arith.addf %91, %92 : vector<8x64xf32>
    %94 = arith.mulf %87, %65 : vector<8x64xf32>
    %95 = arith.mulf %82, %88 : vector<8x64xf32>
    %96 = arith.addf %94, %95 : vector<8x64xf32>
    %97 = math.tanh %96 : vector<8x64xf32>
    %98 = arith.mulf %93, %97 : vector<8x64xf32>
    %99 = vector.extract_strided_slice %98 {offsets = [0, 0], sizes = [8, 32], strides = [1, 1]} : vector<8x64xf32> to vector<8x32xf32>
    %c16_45 = arith.constant 16 : index
    %c0_46 = arith.constant 0 : index
    %100 = vector.load %arg12[%c16_45, %c0_46] : memref<64x64xf32, #tpu.memory_space<vmem>>, vector<8x32xf32>
    tpu.vector_store %arg12[%c16_45, %c0_46], %99 {strides = array<i32>} : memref<64x64xf32, #tpu.memory_space<vmem>>, vector<8x32xf32>,
    %101 = vector.extract_strided_slice %98 {offsets = [0, 32], sizes = [8, 32], strides = [1, 1]} : vector<8x64xf32> to vector<8x32xf32>
    %c40_47 = arith.constant 40 : index
    %c32_48 = arith.constant 32 : index
    %102 = vector.load %arg12[%c40_47, %c32_48] : memref<64x64xf32, #tpu.memory_space<vmem>>, vector<8x32xf32>
    tpu.vector_store %arg12[%c40_47, %c32_48], %101 {strides = array<i32>} : memref<64x64xf32, #tpu.memory_space<vmem>>, vector<8x32xf32>,
    %cst_49 = arith.constant dense<0.000000e+00> : vector<8x256xf32>
    %103 = tpu.matmul %98, %7, %cst_49 {dimension_numbers = #tpu.dot_dimension_numbers<[1], [0], [0], [1], [0, 0, 1, 1], [], []>} : vector<8x64xf32>, vector<64x256xf32>, vector<8x256xf32> -> vector<8x256xf32>
    %c24 = arith.constant 24 : index
    %c0_50 = arith.constant 0 : index
    %104 = vector.load %arg11[%c24, %c0_50] : memref<64x512xf32, #tpu.memory_space<vmem>>, vector<8x256xf32>
    %c32_51 = arith.constant 32 : index
    %c256_52 = arith.constant 256 : index
    %105 = vector.load %arg11[%c32_51, %c256_52] : memref<64x512xf32, #tpu.memory_space<vmem>>, vector<8x256xf32>
    %106 = arith.addf %104, %105 : vector<8x256xf32>
    %107 = arith.addf %106, %103 : vector<8x256xf32>
    %108 = math.tanh %107 : vector<8x256xf32>
    %109 = vector.extract_strided_slice %108 {offsets = [0, 0], sizes = [8, 64], strides = [1, 1]} : vector<8x256xf32> to vector<8x64xf32>
    %cst_53 = arith.constant 5.000000e-01 : f32
    %110 = vector.broadcast %cst_53 : f32 to vector<8x64xf32>
    %111 = arith.mulf %110, %109 : vector<8x64xf32>
    %cst_54 = arith.constant 5.000000e-01 : f32
    %112 = vector.broadcast %cst_54 : f32 to vector<8x64xf32>
    %113 = arith.addf %111, %112 : vector<8x64xf32>
    %114 = vector.extract_strided_slice %108 {offsets = [0, 64], sizes = [8, 64], strides = [1, 1]} : vector<8x256xf32> to vector<8x64xf32>
    %cst_55 = arith.constant 5.000000e-01 : f32
    %115 = vector.broadcast %cst_55 : f32 to vector<8x64xf32>
    %116 = arith.mulf %115, %114 : vector<8x64xf32>
    %cst_56 = arith.constant 5.000000e-01 : f32
    %117 = vector.broadcast %cst_56 : f32 to vector<8x64xf32>
    %118 = arith.addf %116, %117 : vector<8x64xf32>
    %119 = vector.extract_strided_slice %108 {offsets = [0, 128], sizes = [8, 64], strides = [1, 1]} : vector<8x256xf32> to vector<8x64xf32>
    %120 = vector.extract_strided_slice %108 {offsets = [0, 192], sizes = [8, 64], strides = [1, 1]} : vector<8x256xf32> to vector<8x64xf32>
    %cst_57 = arith.constant 5.000000e-01 : f32
    %121 = vector.broadcast %cst_57 : f32 to vector<8x64xf32>
    %122 = arith.mulf %121, %120 : vector<8x64xf32>
    %cst_58 = arith.constant 5.000000e-01 : f32
    %123 = vector.broadcast %cst_58 : f32 to vector<8x64xf32>
    %124 = arith.addf %122, %123 : vector<8x64xf32>
    %125 = arith.mulf %118, %96 : vector<8x64xf32>
    %126 = arith.mulf %113, %119 : vector<8x64xf32>
    %127 = arith.addf %125, %126 : vector<8x64xf32>
    %128 = math.tanh %127 : vector<8x64xf32>
    %129 = arith.mulf %124, %128 : vector<8x64xf32>
    %130 = vector.extract_strided_slice %129 {offsets = [0, 0], sizes = [8, 32], strides = [1, 1]} : vector<8x64xf32> to vector<8x32xf32>
    %c24_59 = arith.constant 24 : index
    %c0_60 = arith.constant 0 : index
    %131 = vector.load %arg12[%c24_59, %c0_60] : memref<64x64xf32, #tpu.memory_space<vmem>>, vector<8x32xf32>
    tpu.vector_store %arg12[%c24_59, %c0_60], %130 {strides = array<i32>} : memref<64x64xf32, #tpu.memory_space<vmem>>, vector<8x32xf32>,
    %132 = vector.extract_strided_slice %129 {offsets = [0, 32], sizes = [8, 32], strides = [1, 1]} : vector<8x64xf32> to vector<8x32xf32>
    %c32_61 = arith.constant 32 : index
    %c32_62 = arith.constant 32 : index
    %133 = vector.load %arg12[%c32_61, %c32_62] : memref<64x64xf32, #tpu.memory_space<vmem>>, vector<8x32xf32>
    tpu.vector_store %arg12[%c32_61, %c32_62], %132 {strides = array<i32>} : memref<64x64xf32, #tpu.memory_space<vmem>>, vector<8x32xf32>,
    %cst_63 = arith.constant dense<0.000000e+00> : vector<8x256xf32>
    %134 = tpu.matmul %129, %7, %cst_63 {dimension_numbers = #tpu.dot_dimension_numbers<[1], [0], [0], [1], [0, 0, 1, 1], [], []>} : vector<8x64xf32>, vector<64x256xf32>, vector<8x256xf32> -> vector<8x256xf32>
    %c32_64 = arith.constant 32 : index
    %c0_65 = arith.constant 0 : index
    %135 = vector.load %arg11[%c32_64, %c0_65] : memref<64x512xf32, #tpu.memory_space<vmem>>, vector<8x256xf32>
    %c24_66 = arith.constant 24 : index
    %c256_67 = arith.constant 256 : index
    %136 = vector.load %arg11[%c24_66, %c256_67] : memref<64x512xf32, #tpu.memory_space<vmem>>, vector<8x256xf32>
    %137 = arith.addf %135, %136 : vector<8x256xf32>
    %138 = arith.addf %137, %134 : vector<8x256xf32>
    %139 = math.tanh %138 : vector<8x256xf32>
    %140 = vector.extract_strided_slice %139 {offsets = [0, 0], sizes = [8, 64], strides = [1, 1]} : vector<8x256xf32> to vector<8x64xf32>
    %cst_68 = arith.constant 5.000000e-01 : f32
    %141 = vector.broadcast %cst_68 : f32 to vector<8x64xf32>
    %142 = arith.mulf %141, %140 : vector<8x64xf32>
    %cst_69 = arith.constant 5.000000e-01 : f32
    %143 = vector.broadcast %cst_69 : f32 to vector<8x64xf32>
    %144 = arith.addf %142, %143 : vector<8x64xf32>
    %145 = vector.extract_strided_slice %139 {offsets = [0, 64], sizes = [8, 64], strides = [1, 1]} : vector<8x256xf32> to vector<8x64xf32>
    %cst_70 = arith.constant 5.000000e-01 : f32
    %146 = vector.broadcast %cst_70 : f32 to vector<8x64xf32>
    %147 = arith.mulf %146, %145 : vector<8x64xf32>
    %cst_71 = arith.constant 5.000000e-01 : f32
    %148 = vector.broadcast %cst_71 : f32 to vector<8x64xf32>
    %149 = arith.addf %147, %148 : vector<8x64xf32>
    %150 = vector.extract_strided_slice %139 {offsets = [0, 128], sizes = [8, 64], strides = [1, 1]} : vector<8x256xf32> to vector<8x64xf32>
    %151 = vector.extract_strided_slice %139 {offsets = [0, 192], sizes = [8, 64], strides = [1, 1]} : vector<8x256xf32> to vector<8x64xf32>
    %cst_72 = arith.constant 5.000000e-01 : f32
    %152 = vector.broadcast %cst_72 : f32 to vector<8x64xf32>
    %153 = arith.mulf %152, %151 : vector<8x64xf32>
    %cst_73 = arith.constant 5.000000e-01 : f32
    %154 = vector.broadcast %cst_73 : f32 to vector<8x64xf32>
    %155 = arith.addf %153, %154 : vector<8x64xf32>
    %156 = arith.mulf %149, %127 : vector<8x64xf32>
    %157 = arith.mulf %144, %150 : vector<8x64xf32>
    %158 = arith.addf %156, %157 : vector<8x64xf32>
    %159 = math.tanh %158 : vector<8x64xf32>
    %160 = arith.mulf %155, %159 : vector<8x64xf32>
    %161 = vector.extract_strided_slice %160 {offsets = [0, 0], sizes = [8, 32], strides = [1, 1]} : vector<8x64xf32> to vector<8x32xf32>
    %c32_74 = arith.constant 32 : index
    %c0_75 = arith.constant 0 : index
    %162 = vector.load %arg12[%c32_74, %c0_75] : memref<64x64xf32, #tpu.memory_space<vmem>>, vector<8x32xf32>
    tpu.vector_store %arg12[%c32_74, %c0_75], %161 {strides = array<i32>} : memref<64x64xf32, #tpu.memory_space<vmem>>, vector<8x32xf32>,
    %163 = vector.extract_strided_slice %160 {offsets = [0, 32], sizes = [8, 32], strides = [1, 1]} : vector<8x64xf32> to vector<8x32xf32>
    %c24_76 = arith.constant 24 : index
    %c32_77 = arith.constant 32 : index
    %164 = vector.load %arg12[%c24_76, %c32_77] : memref<64x64xf32, #tpu.memory_space<vmem>>, vector<8x32xf32>
    tpu.vector_store %arg12[%c24_76, %c32_77], %163 {strides = array<i32>} : memref<64x64xf32, #tpu.memory_space<vmem>>, vector<8x32xf32>,
    %cst_78 = arith.constant dense<0.000000e+00> : vector<8x256xf32>
    %165 = tpu.matmul %160, %7, %cst_78 {dimension_numbers = #tpu.dot_dimension_numbers<[1], [0], [0], [1], [0, 0, 1, 1], [], []>} : vector<8x64xf32>, vector<64x256xf32>, vector<8x256xf32> -> vector<8x256xf32>
    %c40_79 = arith.constant 40 : index
    %c0_80 = arith.constant 0 : index
    %166 = vector.load %arg11[%c40_79, %c0_80] : memref<64x512xf32, #tpu.memory_space<vmem>>, vector<8x256xf32>
    %c16_81 = arith.constant 16 : index
    %c256_82 = arith.constant 256 : index
    %167 = vector.load %arg11[%c16_81, %c256_82] : memref<64x512xf32, #tpu.memory_space<vmem>>, vector<8x256xf32>
    %168 = arith.addf %166, %167 : vector<8x256xf32>
    %169 = arith.addf %168, %165 : vector<8x256xf32>
    %170 = math.tanh %169 : vector<8x256xf32>
    %171 = vector.extract_strided_slice %170 {offsets = [0, 0], sizes = [8, 64], strides = [1, 1]} : vector<8x256xf32> to vector<8x64xf32>
    %cst_83 = arith.constant 5.000000e-01 : f32
    %172 = vector.broadcast %cst_83 : f32 to vector<8x64xf32>
    %173 = arith.mulf %172, %171 : vector<8x64xf32>
    %cst_84 = arith.constant 5.000000e-01 : f32
    %174 = vector.broadcast %cst_84 : f32 to vector<8x64xf32>
    %175 = arith.addf %173, %174 : vector<8x64xf32>
    %176 = vector.extract_strided_slice %170 {offsets = [0, 64], sizes = [8, 64], strides = [1, 1]} : vector<8x256xf32> to vector<8x64xf32>
    %cst_85 = arith.constant 5.000000e-01 : f32
    %177 = vector.broadcast %cst_85 : f32 to vector<8x64xf32>
    %178 = arith.mulf %177, %176 : vector<8x64xf32>
    %cst_86 = arith.constant 5.000000e-01 : f32
    %179 = vector.broadcast %cst_86 : f32 to vector<8x64xf32>
    %180 = arith.addf %178, %179 : vector<8x64xf32>
    %181 = vector.extract_strided_slice %170 {offsets = [0, 128], sizes = [8, 64], strides = [1, 1]} : vector<8x256xf32> to vector<8x64xf32>
    %182 = vector.extract_strided_slice %170 {offsets = [0, 192], sizes = [8, 64], strides = [1, 1]} : vector<8x256xf32> to vector<8x64xf32>
    %cst_87 = arith.constant 5.000000e-01 : f32
    %183 = vector.broadcast %cst_87 : f32 to vector<8x64xf32>
    %184 = arith.mulf %183, %182 : vector<8x64xf32>
    %cst_88 = arith.constant 5.000000e-01 : f32
    %185 = vector.broadcast %cst_88 : f32 to vector<8x64xf32>
    %186 = arith.addf %184, %185 : vector<8x64xf32>
    %187 = arith.mulf %180, %158 : vector<8x64xf32>
    %188 = arith.mulf %175, %181 : vector<8x64xf32>
    %189 = arith.addf %187, %188 : vector<8x64xf32>
    %190 = math.tanh %189 : vector<8x64xf32>
    %191 = arith.mulf %186, %190 : vector<8x64xf32>
    %192 = vector.extract_strided_slice %191 {offsets = [0, 0], sizes = [8, 32], strides = [1, 1]} : vector<8x64xf32> to vector<8x32xf32>
    %c40_89 = arith.constant 40 : index
    %c0_90 = arith.constant 0 : index
    %193 = vector.load %arg12[%c40_89, %c0_90] : memref<64x64xf32, #tpu.memory_space<vmem>>, vector<8x32xf32>
    tpu.vector_store %arg12[%c40_89, %c0_90], %192 {strides = array<i32>} : memref<64x64xf32, #tpu.memory_space<vmem>>, vector<8x32xf32>,
    %194 = vector.extract_strided_slice %191 {offsets = [0, 32], sizes = [8, 32], strides = [1, 1]} : vector<8x64xf32> to vector<8x32xf32>
    %c16_91 = arith.constant 16 : index
    %c32_92 = arith.constant 32 : index
    %195 = vector.load %arg12[%c16_91, %c32_92] : memref<64x64xf32, #tpu.memory_space<vmem>>, vector<8x32xf32>
    tpu.vector_store %arg12[%c16_91, %c32_92], %194 {strides = array<i32>} : memref<64x64xf32, #tpu.memory_space<vmem>>, vector<8x32xf32>,
    %cst_93 = arith.constant dense<0.000000e+00> : vector<8x256xf32>
    %196 = tpu.matmul %191, %7, %cst_93 {dimension_numbers = #tpu.dot_dimension_numbers<[1], [0], [0], [1], [0, 0, 1, 1], [], []>} : vector<8x64xf32>, vector<64x256xf32>, vector<8x256xf32> -> vector<8x256xf32>
    %c48_94 = arith.constant 48 : index
    %c0_95 = arith.constant 0 : index
    %197 = vector.load %arg11[%c48_94, %c0_95] : memref<64x512xf32, #tpu.memory_space<vmem>>, vector<8x256xf32>
    %c8_96 = arith.constant 8 : index
    %c256_97 = arith.constant 256 : index
    %198 = vector.load %arg11[%c8_96, %c256_97] : memref<64x512xf32, #tpu.memory_space<vmem>>, vector<8x256xf32>
    %199 = arith.addf %197, %198 : vector<8x256xf32>
    %200 = arith.addf %199, %196 : vector<8x256xf32>
    %201 = math.tanh %200 : vector<8x256xf32>
    %202 = vector.extract_strided_slice %201 {offsets = [0, 0], sizes = [8, 64], strides = [1, 1]} : vector<8x256xf32> to vector<8x64xf32>
    %cst_98 = arith.constant 5.000000e-01 : f32
    %203 = vector.broadcast %cst_98 : f32 to vector<8x64xf32>
    %204 = arith.mulf %203, %202 : vector<8x64xf32>
    %cst_99 = arith.constant 5.000000e-01 : f32
    %205 = vector.broadcast %cst_99 : f32 to vector<8x64xf32>
    %206 = arith.addf %204, %205 : vector<8x64xf32>
    %207 = vector.extract_strided_slice %201 {offsets = [0, 64], sizes = [8, 64], strides = [1, 1]} : vector<8x256xf32> to vector<8x64xf32>
    %cst_100 = arith.constant 5.000000e-01 : f32
    %208 = vector.broadcast %cst_100 : f32 to vector<8x64xf32>
    %209 = arith.mulf %208, %207 : vector<8x64xf32>
    %cst_101 = arith.constant 5.000000e-01 : f32
    %210 = vector.broadcast %cst_101 : f32 to vector<8x64xf32>
    %211 = arith.addf %209, %210 : vector<8x64xf32>
    %212 = vector.extract_strided_slice %201 {offsets = [0, 128], sizes = [8, 64], strides = [1, 1]} : vector<8x256xf32> to vector<8x64xf32>
    %213 = vector.extract_strided_slice %201 {offsets = [0, 192], sizes = [8, 64], strides = [1, 1]} : vector<8x256xf32> to vector<8x64xf32>
    %cst_102 = arith.constant 5.000000e-01 : f32
    %214 = vector.broadcast %cst_102 : f32 to vector<8x64xf32>
    %215 = arith.mulf %214, %213 : vector<8x64xf32>
    %cst_103 = arith.constant 5.000000e-01 : f32
    %216 = vector.broadcast %cst_103 : f32 to vector<8x64xf32>
    %217 = arith.addf %215, %216 : vector<8x64xf32>
    %218 = arith.mulf %211, %189 : vector<8x64xf32>
    %219 = arith.mulf %206, %212 : vector<8x64xf32>
    %220 = arith.addf %218, %219 : vector<8x64xf32>
    %221 = math.tanh %220 : vector<8x64xf32>
    %222 = arith.mulf %217, %221 : vector<8x64xf32>
    %223 = vector.extract_strided_slice %222 {offsets = [0, 0], sizes = [8, 32], strides = [1, 1]} : vector<8x64xf32> to vector<8x32xf32>
    %c48_104 = arith.constant 48 : index
    %c0_105 = arith.constant 0 : index
    %224 = vector.load %arg12[%c48_104, %c0_105] : memref<64x64xf32, #tpu.memory_space<vmem>>, vector<8x32xf32>
    tpu.vector_store %arg12[%c48_104, %c0_105], %223 {strides = array<i32>} : memref<64x64xf32, #tpu.memory_space<vmem>>, vector<8x32xf32>,
    %225 = vector.extract_strided_slice %222 {offsets = [0, 32], sizes = [8, 32], strides = [1, 1]} : vector<8x64xf32> to vector<8x32xf32>
    %c8_106 = arith.constant 8 : index
    %c32_107 = arith.constant 32 : index
    %226 = vector.load %arg12[%c8_106, %c32_107] : memref<64x64xf32, #tpu.memory_space<vmem>>, vector<8x32xf32>
    tpu.vector_store %arg12[%c8_106, %c32_107], %225 {strides = array<i32>} : memref<64x64xf32, #tpu.memory_space<vmem>>, vector<8x32xf32>,
    %cst_108 = arith.constant dense<0.000000e+00> : vector<8x256xf32>
    %227 = tpu.matmul %222, %7, %cst_108 {dimension_numbers = #tpu.dot_dimension_numbers<[1], [0], [0], [1], [0, 0, 1, 1], [], []>} : vector<8x64xf32>, vector<64x256xf32>, vector<8x256xf32> -> vector<8x256xf32>
    %c56_109 = arith.constant 56 : index
    %c0_110 = arith.constant 0 : index
    %228 = vector.load %arg11[%c56_109, %c0_110] : memref<64x512xf32, #tpu.memory_space<vmem>>, vector<8x256xf32>
    %c0_111 = arith.constant 0 : index
    %c256_112 = arith.constant 256 : index
    %229 = vector.load %arg11[%c0_111, %c256_112] : memref<64x512xf32, #tpu.memory_space<vmem>>, vector<8x256xf32>
    %230 = arith.addf %228, %229 : vector<8x256xf32>
    %231 = arith.addf %230, %227 : vector<8x256xf32>
    %232 = math.tanh %231 : vector<8x256xf32>
    %233 = vector.extract_strided_slice %232 {offsets = [0, 0], sizes = [8, 64], strides = [1, 1]} : vector<8x256xf32> to vector<8x64xf32>
    %cst_113 = arith.constant 5.000000e-01 : f32
    %234 = vector.broadcast %cst_113 : f32 to vector<8x64xf32>
    %235 = arith.mulf %234, %233 : vector<8x64xf32>
    %cst_114 = arith.constant 5.000000e-01 : f32
    %236 = vector.broadcast %cst_114 : f32 to vector<8x64xf32>
    %237 = arith.addf %235, %236 : vector<8x64xf32>
    %238 = vector.extract_strided_slice %232 {offsets = [0, 64], sizes = [8, 64], strides = [1, 1]} : vector<8x256xf32> to vector<8x64xf32>
    %cst_115 = arith.constant 5.000000e-01 : f32
    %239 = vector.broadcast %cst_115 : f32 to vector<8x64xf32>
    %240 = arith.mulf %239, %238 : vector<8x64xf32>
    %cst_116 = arith.constant 5.000000e-01 : f32
    %241 = vector.broadcast %cst_116 : f32 to vector<8x64xf32>
    %242 = arith.addf %240, %241 : vector<8x64xf32>
    %243 = vector.extract_strided_slice %232 {offsets = [0, 128], sizes = [8, 64], strides = [1, 1]} : vector<8x256xf32> to vector<8x64xf32>
    %244 = vector.extract_strided_slice %232 {offsets = [0, 192], sizes = [8, 64], strides = [1, 1]} : vector<8x256xf32> to vector<8x64xf32>
    %cst_117 = arith.constant 5.000000e-01 : f32
    %245 = vector.broadcast %cst_117 : f32 to vector<8x64xf32>
    %246 = arith.mulf %245, %244 : vector<8x64xf32>
    %cst_118 = arith.constant 5.000000e-01 : f32
    %247 = vector.broadcast %cst_118 : f32 to vector<8x64xf32>
    %248 = arith.addf %246, %247 : vector<8x64xf32>
    %249 = arith.mulf %242, %220 : vector<8x64xf32>
    %250 = arith.mulf %237, %243 : vector<8x64xf32>
    %251 = arith.addf %249, %250 : vector<8x64xf32>
    %252 = math.tanh %251 : vector<8x64xf32>
    %253 = arith.mulf %248, %252 : vector<8x64xf32>
    %254 = vector.extract_strided_slice %253 {offsets = [0, 0], sizes = [8, 32], strides = [1, 1]} : vector<8x64xf32> to vector<8x32xf32>
    %c56_119 = arith.constant 56 : index
    %c0_120 = arith.constant 0 : index
    %255 = vector.load %arg12[%c56_119, %c0_120] : memref<64x64xf32, #tpu.memory_space<vmem>>, vector<8x32xf32>
    tpu.vector_store %arg12[%c56_119, %c0_120], %254 {strides = array<i32>} : memref<64x64xf32, #tpu.memory_space<vmem>>, vector<8x32xf32>,
    %256 = vector.extract_strided_slice %253 {offsets = [0, 32], sizes = [8, 32], strides = [1, 1]} : vector<8x64xf32> to vector<8x32xf32>
    %c0_121 = arith.constant 0 : index
    %c32_122 = arith.constant 32 : index
    %257 = vector.load %arg12[%c0_121, %c32_122] : memref<64x64xf32, #tpu.memory_space<vmem>>, vector<8x32xf32>
    tpu.vector_store %arg12[%c0_121, %c32_122], %256 {strides = array<i32>} : memref<64x64xf32, #tpu.memory_space<vmem>>, vector<8x32xf32>,
    %c0_123 = arith.constant 0 : index
    %c0_124 = arith.constant 0 : index
    %258 = vector.load %arg12[%c0_123, %c0_124] : memref<64x64xf32, #tpu.memory_space<vmem>>, vector<64x64xf32>
    %c0_125 = arith.constant 0 : index
    %c0_126 = arith.constant 0 : index
    %259 = vector.load %arg5[%c0_125, %c0_126] : memref<64x512xf32, #tpu.memory_space<vmem>>, vector<64x512xf32>
    %cst_127 = arith.constant dense<0.000000e+00> : vector<64x512xf32>
    %260 = tpu.matmul %258, %259, %cst_127 {dimension_numbers = #tpu.dot_dimension_numbers<[1], [0], [0], [1], [0, 0, 1, 1], [], []>} : vector<64x64xf32>, vector<64x512xf32>, vector<64x512xf32> -> vector<64x512xf32>
    %c0_128 = arith.constant 0 : index
    %c0_129 = arith.constant 0 : index
    %261 = vector.load %arg7[%c0_128, %c0_129] : memref<1x512xf32, #tpu.memory_space<vmem>>, vector<1x512xf32>
    %262 = vector.broadcast %261 : vector<1x512xf32> to vector<64x512xf32>
    %263 = arith.addf %260, %262 : vector<64x512xf32>
    %c0_130 = arith.constant 0 : index
    %c0_131 = arith.constant 0 : index
    %264 = vector.load %arg11[%c0_130, %c0_131] : memref<64x512xf32, #tpu.memory_space<vmem>>, vector<64x512xf32>
    tpu.vector_store %arg11[%c0_130, %c0_131], %263 {strides = array<i32>} : memref<64x512xf32, #tpu.memory_space<vmem>>, vector<64x512xf32>,
    %c0_132 = arith.constant 0 : index
    %c0_133 = arith.constant 0 : index
    %265 = vector.load %arg6[%c0_132, %c0_133] : memref<64x256xf32, #tpu.memory_space<vmem>>, vector<64x256xf32>
    %cst_134 = arith.constant 0.000000e+00 : f32
    %266 = vector.broadcast %cst_134 : f32 to vector<8x64xf32>
    %cst_135 = arith.constant 0.000000e+00 : f32
    %267 = vector.broadcast %cst_135 : f32 to vector<8x64xf32>
    %cst_136 = arith.constant 0.000000e+00 : f32
    %268 = vector.broadcast %cst_136 : f32 to vector<8x64xf32>
    %cst_137 = arith.constant dense<0.000000e+00> : vector<8x256xf32>
    %269 = tpu.matmul %266, %265, %cst_137 {dimension_numbers = #tpu.dot_dimension_numbers<[1], [0], [0], [1], [0, 0, 1, 1], [], []>} : vector<8x64xf32>, vector<64x256xf32>, vector<8x256xf32> -> vector<8x256xf32>
    %c0_138 = arith.constant 0 : index
    %c0_139 = arith.constant 0 : index
    %270 = vector.load %arg11[%c0_138, %c0_139] : memref<64x512xf32, #tpu.memory_space<vmem>>, vector<8x256xf32>
    %c56_140 = arith.constant 56 : index
    %c256_141 = arith.constant 256 : index
    %271 = vector.load %arg11[%c56_140, %c256_141] : memref<64x512xf32, #tpu.memory_space<vmem>>, vector<8x256xf32>
    %272 = arith.addf %270, %271 : vector<8x256xf32>
    %273 = arith.addf %272, %269 : vector<8x256xf32>
    %274 = math.tanh %273 : vector<8x256xf32>
    %275 = vector.extract_strided_slice %274 {offsets = [0, 0], sizes = [8, 64], strides = [1, 1]} : vector<8x256xf32> to vector<8x64xf32>
    %cst_142 = arith.constant 5.000000e-01 : f32
    %276 = vector.broadcast %cst_142 : f32 to vector<8x64xf32>
    %277 = arith.mulf %276, %275 : vector<8x64xf32>
    %cst_143 = arith.constant 5.000000e-01 : f32
    %278 = vector.broadcast %cst_143 : f32 to vector<8x64xf32>
    %279 = arith.addf %277, %278 : vector<8x64xf32>
    %280 = vector.extract_strided_slice %274 {offsets = [0, 64], sizes = [8, 64], strides = [1, 1]} : vector<8x256xf32> to vector<8x64xf32>
    %cst_144 = arith.constant 5.000000e-01 : f32
    %281 = vector.broadcast %cst_144 : f32 to vector<8x64xf32>
    %282 = arith.mulf %281, %280 : vector<8x64xf32>
    %cst_145 = arith.constant 5.000000e-01 : f32
    %283 = vector.broadcast %cst_145 : f32 to vector<8x64xf32>
    %284 = arith.addf %282, %283 : vector<8x64xf32>
    %285 = vector.extract_strided_slice %274 {offsets = [0, 128], sizes = [8, 64], strides = [1, 1]} : vector<8x256xf32> to vector<8x64xf32>
    %286 = vector.extract_strided_slice %274 {offsets = [0, 192], sizes = [8, 64], strides = [1, 1]} : vector<8x256xf32> to vector<8x64xf32>
    %cst_146 = arith.constant 5.000000e-01 : f32
    %287 = vector.broadcast %cst_146 : f32 to vector<8x64xf32>
    %288 = arith.mulf %287, %286 : vector<8x64xf32>
    %cst_147 = arith.constant 5.000000e-01 : f32
    %289 = vector.broadcast %cst_147 : f32 to vector<8x64xf32>
    %290 = arith.addf %288, %289 : vector<8x64xf32>
    %291 = arith.mulf %284, %267 : vector<8x64xf32>
    %292 = arith.mulf %279, %285 : vector<8x64xf32>
    %293 = arith.addf %291, %292 : vector<8x64xf32>
    %294 = math.tanh %293 : vector<8x64xf32>
    %295 = arith.mulf %290, %294 : vector<8x64xf32>
    %296 = arith.addf %268, %295 : vector<8x64xf32>
    %cst_148 = arith.constant dense<0.000000e+00> : vector<8x256xf32>
    %297 = tpu.matmul %295, %265, %cst_148 {dimension_numbers = #tpu.dot_dimension_numbers<[1], [0], [0], [1], [0, 0, 1, 1], [], []>} : vector<8x64xf32>, vector<64x256xf32>, vector<8x256xf32> -> vector<8x256xf32>
    %c8_149 = arith.constant 8 : index
    %c0_150 = arith.constant 0 : index
    %298 = vector.load %arg11[%c8_149, %c0_150] : memref<64x512xf32, #tpu.memory_space<vmem>>, vector<8x256xf32>
    %c48_151 = arith.constant 48 : index
    %c256_152 = arith.constant 256 : index
    %299 = vector.load %arg11[%c48_151, %c256_152] : memref<64x512xf32, #tpu.memory_space<vmem>>, vector<8x256xf32>
    %300 = arith.addf %298, %299 : vector<8x256xf32>
    %301 = arith.addf %300, %297 : vector<8x256xf32>
    %302 = math.tanh %301 : vector<8x256xf32>
    %303 = vector.extract_strided_slice %302 {offsets = [0, 0], sizes = [8, 64], strides = [1, 1]} : vector<8x256xf32> to vector<8x64xf32>
    %cst_153 = arith.constant 5.000000e-01 : f32
    %304 = vector.broadcast %cst_153 : f32 to vector<8x64xf32>
    %305 = arith.mulf %304, %303 : vector<8x64xf32>
    %cst_154 = arith.constant 5.000000e-01 : f32
    %306 = vector.broadcast %cst_154 : f32 to vector<8x64xf32>
    %307 = arith.addf %305, %306 : vector<8x64xf32>
    %308 = vector.extract_strided_slice %302 {offsets = [0, 64], sizes = [8, 64], strides = [1, 1]} : vector<8x256xf32> to vector<8x64xf32>
    %cst_155 = arith.constant 5.000000e-01 : f32
    %309 = vector.broadcast %cst_155 : f32 to vector<8x64xf32>
    %310 = arith.mulf %309, %308 : vector<8x64xf32>
    %cst_156 = arith.constant 5.000000e-01 : f32
    %311 = vector.broadcast %cst_156 : f32 to vector<8x64xf32>
    %312 = arith.addf %310, %311 : vector<8x64xf32>
    %313 = vector.extract_strided_slice %302 {offsets = [0, 128], sizes = [8, 64], strides = [1, 1]} : vector<8x256xf32> to vector<8x64xf32>
    %314 = vector.extract_strided_slice %302 {offsets = [0, 192], sizes = [8, 64], strides = [1, 1]} : vector<8x256xf32> to vector<8x64xf32>
    %cst_157 = arith.constant 5.000000e-01 : f32
    %315 = vector.broadcast %cst_157 : f32 to vector<8x64xf32>
    %316 = arith.mulf %315, %314 : vector<8x64xf32>
    %cst_158 = arith.constant 5.000000e-01 : f32
    %317 = vector.broadcast %cst_158 : f32 to vector<8x64xf32>
    %318 = arith.addf %316, %317 : vector<8x64xf32>
    %319 = arith.mulf %312, %293 : vector<8x64xf32>
    %320 = arith.mulf %307, %313 : vector<8x64xf32>
    %321 = arith.addf %319, %320 : vector<8x64xf32>
    %322 = math.tanh %321 : vector<8x64xf32>
    %323 = arith.mulf %318, %322 : vector<8x64xf32>
    %324 = arith.addf %296, %323 : vector<8x64xf32>
    %cst_159 = arith.constant dense<0.000000e+00> : vector<8x256xf32>
    %325 = tpu.matmul %323, %265, %cst_159 {dimension_numbers = #tpu.dot_dimension_numbers<[1], [0], [0], [1], [0, 0, 1, 1], [], []>} : vector<8x64xf32>, vector<64x256xf32>, vector<8x256xf32> -> vector<8x256xf32>
    %c16_160 = arith.constant 16 : index
    %c0_161 = arith.constant 0 : index
    %326 = vector.load %arg11[%c16_160, %c0_161] : memref<64x512xf32, #tpu.memory_space<vmem>>, vector<8x256xf32>
    %c40_162 = arith.constant 40 : index
    %c256_163 = arith.constant 256 : index
    %327 = vector.load %arg11[%c40_162, %c256_163] : memref<64x512xf32, #tpu.memory_space<vmem>>, vector<8x256xf32>
    %328 = arith.addf %326, %327 : vector<8x256xf32>
    %329 = arith.addf %328, %325 : vector<8x256xf32>
    %330 = math.tanh %329 : vector<8x256xf32>
    %331 = vector.extract_strided_slice %330 {offsets = [0, 0], sizes = [8, 64], strides = [1, 1]} : vector<8x256xf32> to vector<8x64xf32>
    %cst_164 = arith.constant 5.000000e-01 : f32
    %332 = vector.broadcast %cst_164 : f32 to vector<8x64xf32>
    %333 = arith.mulf %332, %331 : vector<8x64xf32>
    %cst_165 = arith.constant 5.000000e-01 : f32
    %334 = vector.broadcast %cst_165 : f32 to vector<8x64xf32>
    %335 = arith.addf %333, %334 : vector<8x64xf32>
    %336 = vector.extract_strided_slice %330 {offsets = [0, 64], sizes = [8, 64], strides = [1, 1]} : vector<8x256xf32> to vector<8x64xf32>
    %cst_166 = arith.constant 5.000000e-01 : f32
    %337 = vector.broadcast %cst_166 : f32 to vector<8x64xf32>
    %338 = arith.mulf %337, %336 : vector<8x64xf32>
    %cst_167 = arith.constant 5.000000e-01 : f32
    %339 = vector.broadcast %cst_167 : f32 to vector<8x64xf32>
    %340 = arith.addf %338, %339 : vector<8x64xf32>
    %341 = vector.extract_strided_slice %330 {offsets = [0, 128], sizes = [8, 64], strides = [1, 1]} : vector<8x256xf32> to vector<8x64xf32>
    %342 = vector.extract_strided_slice %330 {offsets = [0, 192], sizes = [8, 64], strides = [1, 1]} : vector<8x256xf32> to vector<8x64xf32>
    %cst_168 = arith.constant 5.000000e-01 : f32
    %343 = vector.broadcast %cst_168 : f32 to vector<8x64xf32>
    %344 = arith.mulf %343, %342 : vector<8x64xf32>
    %cst_169 = arith.constant 5.000000e-01 : f32
    %345 = vector.broadcast %cst_169 : f32 to vector<8x64xf32>
    %346 = arith.addf %344, %345 : vector<8x64xf32>
    %347 = arith.mulf %340, %321 : vector<8x64xf32>
    %348 = arith.mulf %335, %341 : vector<8x64xf32>
    %349 = arith.addf %347, %348 : vector<8x64xf32>
    %350 = math.tanh %349 : vector<8x64xf32>
    %351 = arith.mulf %346, %350 : vector<8x64xf32>
    %352 = arith.addf %324, %351 : vector<8x64xf32>
    %cst_170 = arith.constant dense<0.000000e+00> : vector<8x256xf32>
    %353 = tpu.matmul %351, %265, %cst_170 {dimension_numbers = #tpu.dot_dimension_numbers<[1], [0], [0], [1], [0, 0, 1, 1], [], []>} : vector<8x64xf32>, vector<64x256xf32>, vector<8x256xf32> -> vector<8x256xf32>
    %c24_171 = arith.constant 24 : index
    %c0_172 = arith.constant 0 : index
    %354 = vector.load %arg11[%c24_171, %c0_172] : memref<64x512xf32, #tpu.memory_space<vmem>>, vector<8x256xf32>
    %c32_173 = arith.constant 32 : index
    %c256_174 = arith.constant 256 : index
    %355 = vector.load %arg11[%c32_173, %c256_174] : memref<64x512xf32, #tpu.memory_space<vmem>>, vector<8x256xf32>
    %356 = arith.addf %354, %355 : vector<8x256xf32>
    %357 = arith.addf %356, %353 : vector<8x256xf32>
    %358 = math.tanh %357 : vector<8x256xf32>
    %359 = vector.extract_strided_slice %358 {offsets = [0, 0], sizes = [8, 64], strides = [1, 1]} : vector<8x256xf32> to vector<8x64xf32>
    %cst_175 = arith.constant 5.000000e-01 : f32
    %360 = vector.broadcast %cst_175 : f32 to vector<8x64xf32>
    %361 = arith.mulf %360, %359 : vector<8x64xf32>
    %cst_176 = arith.constant 5.000000e-01 : f32
    %362 = vector.broadcast %cst_176 : f32 to vector<8x64xf32>
    %363 = arith.addf %361, %362 : vector<8x64xf32>
    %364 = vector.extract_strided_slice %358 {offsets = [0, 64], sizes = [8, 64], strides = [1, 1]} : vector<8x256xf32> to vector<8x64xf32>
    %cst_177 = arith.constant 5.000000e-01 : f32
    %365 = vector.broadcast %cst_177 : f32 to vector<8x64xf32>
    %366 = arith.mulf %365, %364 : vector<8x64xf32>
    %cst_178 = arith.constant 5.000000e-01 : f32
    %367 = vector.broadcast %cst_178 : f32 to vector<8x64xf32>
    %368 = arith.addf %366, %367 : vector<8x64xf32>
    %369 = vector.extract_strided_slice %358 {offsets = [0, 128], sizes = [8, 64], strides = [1, 1]} : vector<8x256xf32> to vector<8x64xf32>
    %370 = vector.extract_strided_slice %358 {offsets = [0, 192], sizes = [8, 64], strides = [1, 1]} : vector<8x256xf32> to vector<8x64xf32>
    %cst_179 = arith.constant 5.000000e-01 : f32
    %371 = vector.broadcast %cst_179 : f32 to vector<8x64xf32>
    %372 = arith.mulf %371, %370 : vector<8x64xf32>
    %cst_180 = arith.constant 5.000000e-01 : f32
    %373 = vector.broadcast %cst_180 : f32 to vector<8x64xf32>
    %374 = arith.addf %372, %373 : vector<8x64xf32>
    %375 = arith.mulf %368, %349 : vector<8x64xf32>
    %376 = arith.mulf %363, %369 : vector<8x64xf32>
    %377 = arith.addf %375, %376 : vector<8x64xf32>
    %378 = math.tanh %377 : vector<8x64xf32>
    %379 = arith.mulf %374, %378 : vector<8x64xf32>
    %380 = arith.addf %352, %379 : vector<8x64xf32>
    %cst_181 = arith.constant dense<0.000000e+00> : vector<8x256xf32>
    %381 = tpu.matmul %379, %265, %cst_181 {dimension_numbers = #tpu.dot_dimension_numbers<[1], [0], [0], [1], [0, 0, 1, 1], [], []>} : vector<8x64xf32>, vector<64x256xf32>, vector<8x256xf32> -> vector<8x256xf32>
    %c32_182 = arith.constant 32 : index
    %c0_183 = arith.constant 0 : index
    %382 = vector.load %arg11[%c32_182, %c0_183] : memref<64x512xf32, #tpu.memory_space<vmem>>, vector<8x256xf32>
    %c24_184 = arith.constant 24 : index
    %c256_185 = arith.constant 256 : index
    %383 = vector.load %arg11[%c24_184, %c256_185] : memref<64x512xf32, #tpu.memory_space<vmem>>, vector<8x256xf32>
    %384 = arith.addf %382, %383 : vector<8x256xf32>
    %385 = arith.addf %384, %381 : vector<8x256xf32>
    %386 = math.tanh %385 : vector<8x256xf32>
    %387 = vector.extract_strided_slice %386 {offsets = [0, 0], sizes = [8, 64], strides = [1, 1]} : vector<8x256xf32> to vector<8x64xf32>
    %cst_186 = arith.constant 5.000000e-01 : f32
    %388 = vector.broadcast %cst_186 : f32 to vector<8x64xf32>
    %389 = arith.mulf %388, %387 : vector<8x64xf32>
    %cst_187 = arith.constant 5.000000e-01 : f32
    %390 = vector.broadcast %cst_187 : f32 to vector<8x64xf32>
    %391 = arith.addf %389, %390 : vector<8x64xf32>
    %392 = vector.extract_strided_slice %386 {offsets = [0, 64], sizes = [8, 64], strides = [1, 1]} : vector<8x256xf32> to vector<8x64xf32>
    %cst_188 = arith.constant 5.000000e-01 : f32
    %393 = vector.broadcast %cst_188 : f32 to vector<8x64xf32>
    %394 = arith.mulf %393, %392 : vector<8x64xf32>
    %cst_189 = arith.constant 5.000000e-01 : f32
    %395 = vector.broadcast %cst_189 : f32 to vector<8x64xf32>
    %396 = arith.addf %394, %395 : vector<8x64xf32>
    %397 = vector.extract_strided_slice %386 {offsets = [0, 128], sizes = [8, 64], strides = [1, 1]} : vector<8x256xf32> to vector<8x64xf32>
    %398 = vector.extract_strided_slice %386 {offsets = [0, 192], sizes = [8, 64], strides = [1, 1]} : vector<8x256xf32> to vector<8x64xf32>
    %cst_190 = arith.constant 5.000000e-01 : f32
    %399 = vector.broadcast %cst_190 : f32 to vector<8x64xf32>
    %400 = arith.mulf %399, %398 : vector<8x64xf32>
    %cst_191 = arith.constant 5.000000e-01 : f32
    %401 = vector.broadcast %cst_191 : f32 to vector<8x64xf32>
    %402 = arith.addf %400, %401 : vector<8x64xf32>
    %403 = arith.mulf %396, %377 : vector<8x64xf32>
    %404 = arith.mulf %391, %397 : vector<8x64xf32>
    %405 = arith.addf %403, %404 : vector<8x64xf32>
    %406 = math.tanh %405 : vector<8x64xf32>
    %407 = arith.mulf %402, %406 : vector<8x64xf32>
    %408 = arith.addf %380, %407 : vector<8x64xf32>
    %cst_192 = arith.constant dense<0.000000e+00> : vector<8x256xf32>
    %409 = tpu.matmul %407, %265, %cst_192 {dimension_numbers = #tpu.dot_dimension_numbers<[1], [0], [0], [1], [0, 0, 1, 1], [], []>} : vector<8x64xf32>, vector<64x256xf32>, vector<8x256xf32> -> vector<8x256xf32>
    %c40_193 = arith.constant 40 : index
    %c0_194 = arith.constant 0 : index
    %410 = vector.load %arg11[%c40_193, %c0_194] : memref<64x512xf32, #tpu.memory_space<vmem>>, vector<8x256xf32>
    %c16_195 = arith.constant 16 : index
    %c256_196 = arith.constant 256 : index
    %411 = vector.load %arg11[%c16_195, %c256_196] : memref<64x512xf32, #tpu.memory_space<vmem>>, vector<8x256xf32>
    %412 = arith.addf %410, %411 : vector<8x256xf32>
    %413 = arith.addf %412, %409 : vector<8x256xf32>
    %414 = math.tanh %413 : vector<8x256xf32>
    %415 = vector.extract_strided_slice %414 {offsets = [0, 0], sizes = [8, 64], strides = [1, 1]} : vector<8x256xf32> to vector<8x64xf32>
    %cst_197 = arith.constant 5.000000e-01 : f32
    %416 = vector.broadcast %cst_197 : f32 to vector<8x64xf32>
    %417 = arith.mulf %416, %415 : vector<8x64xf32>
    %cst_198 = arith.constant 5.000000e-01 : f32
    %418 = vector.broadcast %cst_198 : f32 to vector<8x64xf32>
    %419 = arith.addf %417, %418 : vector<8x64xf32>
    %420 = vector.extract_strided_slice %414 {offsets = [0, 64], sizes = [8, 64], strides = [1, 1]} : vector<8x256xf32> to vector<8x64xf32>
    %cst_199 = arith.constant 5.000000e-01 : f32
    %421 = vector.broadcast %cst_199 : f32 to vector<8x64xf32>
    %422 = arith.mulf %421, %420 : vector<8x64xf32>
    %cst_200 = arith.constant 5.000000e-01 : f32
    %423 = vector.broadcast %cst_200 : f32 to vector<8x64xf32>
    %424 = arith.addf %422, %423 : vector<8x64xf32>
    %425 = vector.extract_strided_slice %414 {offsets = [0, 128], sizes = [8, 64], strides = [1, 1]} : vector<8x256xf32> to vector<8x64xf32>
    %426 = vector.extract_strided_slice %414 {offsets = [0, 192], sizes = [8, 64], strides = [1, 1]} : vector<8x256xf32> to vector<8x64xf32>
    %cst_201 = arith.constant 5.000000e-01 : f32
    %427 = vector.broadcast %cst_201 : f32 to vector<8x64xf32>
    %428 = arith.mulf %427, %426 : vector<8x64xf32>
    %cst_202 = arith.constant 5.000000e-01 : f32
    %429 = vector.broadcast %cst_202 : f32 to vector<8x64xf32>
    %430 = arith.addf %428, %429 : vector<8x64xf32>
    %431 = arith.mulf %424, %405 : vector<8x64xf32>
    %432 = arith.mulf %419, %425 : vector<8x64xf32>
    %433 = arith.addf %431, %432 : vector<8x64xf32>
    %434 = math.tanh %433 : vector<8x64xf32>
    %435 = arith.mulf %430, %434 : vector<8x64xf32>
    %436 = arith.addf %408, %435 : vector<8x64xf32>
    %cst_203 = arith.constant dense<0.000000e+00> : vector<8x256xf32>
    %437 = tpu.matmul %435, %265, %cst_203 {dimension_numbers = #tpu.dot_dimension_numbers<[1], [0], [0], [1], [0, 0, 1, 1], [], []>} : vector<8x64xf32>, vector<64x256xf32>, vector<8x256xf32> -> vector<8x256xf32>
    %c48_204 = arith.constant 48 : index
    %c0_205 = arith.constant 0 : index
    %438 = vector.load %arg11[%c48_204, %c0_205] : memref<64x512xf32, #tpu.memory_space<vmem>>, vector<8x256xf32>
    %c8_206 = arith.constant 8 : index
    %c256_207 = arith.constant 256 : index
    %439 = vector.load %arg11[%c8_206, %c256_207] : memref<64x512xf32, #tpu.memory_space<vmem>>, vector<8x256xf32>
    %440 = arith.addf %438, %439 : vector<8x256xf32>
    %441 = arith.addf %440, %437 : vector<8x256xf32>
    %442 = math.tanh %441 : vector<8x256xf32>
    %443 = vector.extract_strided_slice %442 {offsets = [0, 0], sizes = [8, 64], strides = [1, 1]} : vector<8x256xf32> to vector<8x64xf32>
    %cst_208 = arith.constant 5.000000e-01 : f32
    %444 = vector.broadcast %cst_208 : f32 to vector<8x64xf32>
    %445 = arith.mulf %444, %443 : vector<8x64xf32>
    %cst_209 = arith.constant 5.000000e-01 : f32
    %446 = vector.broadcast %cst_209 : f32 to vector<8x64xf32>
    %447 = arith.addf %445, %446 : vector<8x64xf32>
    %448 = vector.extract_strided_slice %442 {offsets = [0, 64], sizes = [8, 64], strides = [1, 1]} : vector<8x256xf32> to vector<8x64xf32>
    %cst_210 = arith.constant 5.000000e-01 : f32
    %449 = vector.broadcast %cst_210 : f32 to vector<8x64xf32>
    %450 = arith.mulf %449, %448 : vector<8x64xf32>
    %cst_211 = arith.constant 5.000000e-01 : f32
    %451 = vector.broadcast %cst_211 : f32 to vector<8x64xf32>
    %452 = arith.addf %450, %451 : vector<8x64xf32>
    %453 = vector.extract_strided_slice %442 {offsets = [0, 128], sizes = [8, 64], strides = [1, 1]} : vector<8x256xf32> to vector<8x64xf32>
    %454 = vector.extract_strided_slice %442 {offsets = [0, 192], sizes = [8, 64], strides = [1, 1]} : vector<8x256xf32> to vector<8x64xf32>
    %cst_212 = arith.constant 5.000000e-01 : f32
    %455 = vector.broadcast %cst_212 : f32 to vector<8x64xf32>
    %456 = arith.mulf %455, %454 : vector<8x64xf32>
    %cst_213 = arith.constant 5.000000e-01 : f32
    %457 = vector.broadcast %cst_213 : f32 to vector<8x64xf32>
    %458 = arith.addf %456, %457 : vector<8x64xf32>
    %459 = arith.mulf %452, %433 : vector<8x64xf32>
    %460 = arith.mulf %447, %453 : vector<8x64xf32>
    %461 = arith.addf %459, %460 : vector<8x64xf32>
    %462 = math.tanh %461 : vector<8x64xf32>
    %463 = arith.mulf %458, %462 : vector<8x64xf32>
    %464 = arith.addf %436, %463 : vector<8x64xf32>
    %cst_214 = arith.constant dense<0.000000e+00> : vector<8x256xf32>
    %465 = tpu.matmul %463, %265, %cst_214 {dimension_numbers = #tpu.dot_dimension_numbers<[1], [0], [0], [1], [0, 0, 1, 1], [], []>} : vector<8x64xf32>, vector<64x256xf32>, vector<8x256xf32> -> vector<8x256xf32>
    %c56_215 = arith.constant 56 : index
    %c0_216 = arith.constant 0 : index
    %466 = vector.load %arg11[%c56_215, %c0_216] : memref<64x512xf32, #tpu.memory_space<vmem>>, vector<8x256xf32>
    %c0_217 = arith.constant 0 : index
    %c256_218 = arith.constant 256 : index
    %467 = vector.load %arg11[%c0_217, %c256_218] : memref<64x512xf32, #tpu.memory_space<vmem>>, vector<8x256xf32>
    %468 = arith.addf %466, %467 : vector<8x256xf32>
    %469 = arith.addf %468, %465 : vector<8x256xf32>
    %470 = math.tanh %469 : vector<8x256xf32>
    %471 = vector.extract_strided_slice %470 {offsets = [0, 0], sizes = [8, 64], strides = [1, 1]} : vector<8x256xf32> to vector<8x64xf32>
    %cst_219 = arith.constant 5.000000e-01 : f32
    %472 = vector.broadcast %cst_219 : f32 to vector<8x64xf32>
    %473 = arith.mulf %472, %471 : vector<8x64xf32>
    %cst_220 = arith.constant 5.000000e-01 : f32
    %474 = vector.broadcast %cst_220 : f32 to vector<8x64xf32>
    %475 = arith.addf %473, %474 : vector<8x64xf32>
    %476 = vector.extract_strided_slice %470 {offsets = [0, 64], sizes = [8, 64], strides = [1, 1]} : vector<8x256xf32> to vector<8x64xf32>
    %cst_221 = arith.constant 5.000000e-01 : f32
    %477 = vector.broadcast %cst_221 : f32 to vector<8x64xf32>
    %478 = arith.mulf %477, %476 : vector<8x64xf32>
    %cst_222 = arith.constant 5.000000e-01 : f32
    %479 = vector.broadcast %cst_222 : f32 to vector<8x64xf32>
    %480 = arith.addf %478, %479 : vector<8x64xf32>
    %481 = vector.extract_strided_slice %470 {offsets = [0, 128], sizes = [8, 64], strides = [1, 1]} : vector<8x256xf32> to vector<8x64xf32>
    %482 = vector.extract_strided_slice %470 {offsets = [0, 192], sizes = [8, 64], strides = [1, 1]} : vector<8x256xf32> to vector<8x64xf32>
    %cst_223 = arith.constant 5.000000e-01 : f32
    %483 = vector.broadcast %cst_223 : f32 to vector<8x64xf32>
    %484 = arith.mulf %483, %482 : vector<8x64xf32>
    %cst_224 = arith.constant 5.000000e-01 : f32
    %485 = vector.broadcast %cst_224 : f32 to vector<8x64xf32>
    %486 = arith.addf %484, %485 : vector<8x64xf32>
    %487 = arith.mulf %480, %461 : vector<8x64xf32>
    %488 = arith.mulf %475, %481 : vector<8x64xf32>
    %489 = arith.addf %487, %488 : vector<8x64xf32>
    %490 = math.tanh %489 : vector<8x64xf32>
    %491 = arith.mulf %486, %490 : vector<8x64xf32>
    %492 = arith.addf %464, %491 : vector<8x64xf32>
    %cst_225 = arith.constant 1.250000e-01 : f32
    %493 = vector.broadcast %cst_225 : f32 to vector<8x64xf32>
    %494 = arith.mulf %492, %493 : vector<8x64xf32>
    %c0_226 = arith.constant 0 : index
    %c0_227 = arith.constant 0 : index
    %495 = vector.load %arg8[%c0_226, %c0_227] : memref<64x128xf32, #tpu.memory_space<vmem>>, vector<64x128xf32>
    %cst_228 = arith.constant dense<0.000000e+00> : vector<8x128xf32>
    %496 = tpu.matmul %494, %495, %cst_228 {dimension_numbers = #tpu.dot_dimension_numbers<[1], [0], [0], [1], [0, 0, 1, 1], [], []>} : vector<8x64xf32>, vector<64x128xf32>, vector<8x128xf32> -> vector<8x128xf32>
    %c0_229 = arith.constant 0 : index
    %c0_230 = arith.constant 0 : index
    %497 = vector.load %arg9[%c0_229, %c0_230] : memref<1x128xf32, #tpu.memory_space<vmem>>, vector<1x128xf32>
    %498 = vector.broadcast %497 : vector<1x128xf32> to vector<8x128xf32>
    %499 = arith.addf %496, %498 : vector<8x128xf32>
    %c0_231 = arith.constant 0 : index
    %c0_232 = arith.constant 0 : index
    %500 = vector.load %arg10[%c0_231, %c0_232] : memref<8x128xf32, #tpu.memory_space<vmem>>, vector<8x128xf32>
    tpu.vector_store %arg10[%c0_231, %c0_232], %499 {strides = array<i32>} : memref<8x128xf32, #tpu.memory_space<vmem>>, vector<8x128xf32>,
    return
  }
  func.func @transform_0(%arg0: i32) -> (i32, i32) {
    %c0_i32 = arith.constant 0 : i32
    %c0_i32_0 = arith.constant 0 : i32
    return %arg0, %c0_i32 : i32, i32
  }
  func.func @transform_1(%arg0: i32) -> (i32, i32) {
    %c0_i32 = arith.constant 0 : i32
    %c0_i32_0 = arith.constant 0 : i32
    %c0_i32_1 = arith.constant 0 : i32
    return %c0_i32, %c0_i32_0 : i32, i32
  }
  func.func @transform_2(%arg0: i32) -> (i32, i32) {
    %c0_i32 = arith.constant 0 : i32
    %c0_i32_0 = arith.constant 0 : i32
    %c0_i32_1 = arith.constant 0 : i32
    return %c0_i32, %c0_i32_0 : i32, i32
  }
  func.func @transform_3(%arg0: i32) -> (i32, i32) {
    %c0_i32 = arith.constant 0 : i32
    %c0_i32_0 = arith.constant 0 : i32
    %c0_i32_1 = arith.constant 0 : i32
    return %c0_i32, %c0_i32_0 : i32, i32
  }
  func.func @transform_4(%arg0: i32) -> (i32, i32) {
    %c0_i32 = arith.constant 0 : i32
    %c0_i32_0 = arith.constant 0 : i32
    %c0_i32_1 = arith.constant 0 : i32
    return %c0_i32, %c0_i32_0 : i32, i32
  }
  func.func @transform_5(%arg0: i32) -> (i32, i32) {
    %c0_i32 = arith.constant 0 : i32
    %c0_i32_0 = arith.constant 0 : i32
    %c0_i32_1 = arith.constant 0 : i32
    return %c0_i32, %c0_i32_0 : i32, i32
  }
  func.func @transform_6(%arg0: i32) -> (i32, i32) {
    %c0_i32 = arith.constant 0 : i32
    %c0_i32_0 = arith.constant 0 : i32
    %c0_i32_1 = arith.constant 0 : i32
    return %c0_i32, %c0_i32_0 : i32, i32
  }
  func.func @transform_7(%arg0: i32) -> (i32, i32) {
    %c0_i32 = arith.constant 0 : i32
    %c0_i32_0 = arith.constant 0 : i32
    %c0_i32_1 = arith.constant 0 : i32
    return %c0_i32, %c0_i32_0 : i32, i32
  }
  func.func @transform_8(%arg0: i32) -> (i32, i32) {
    %c0_i32 = arith.constant 0 : i32
    %c0_i32_0 = arith.constant 0 : i32
    %c0_i32_1 = arith.constant 0 : i32
    return %c0_i32, %c0_i32_0 : i32, i32
  }
  func.func @transform_9(%arg0: i32) -> (i32, i32) {
    %c0_i32 = arith.constant 0 : i32
    %c0_i32_0 = arith.constant 0 : i32
    return %arg0, %c0_i32 : i32, i32
  }
}

</mosaic_0001>

<bundles_post_ra>
// kernel: text_rnn_forward.1
= control target key start
LH: loop header
LB: loop body
LE: loop exit
PB: predicated region body
PF: predicated region fallthrough
CT: control target
= control target key end

     0   :  { %v3067_v3 = vmov 0.0   ;;  %vm78_vm0 = vcmask 261120   ;;  %v58_v57 = vlaneseq  ;;  %vm480_vm1 = vcmask 523520   ;;  %s3793_s1 = inlined_call_operand.vmem [shape: f32[32,512], index: 1, kind: input, shape index: {}]   ;;  %s3794_s0 = inlined_call_operand.vmem [shape: f32[64,32], index: 0, kind: input, shape index: {}]   ;;  %s3795_s2 = inlined_call_operand.vmem [shape: f32[64,256], index: 2, kind: input, shape index: {}]   ;;  %s3796_s3 = inlined_call_operand.vmem [shape: f32[1,512], index: 3, kind: input, shape index: {}]   ;;  %s3797_s4 = inlined_call_operand.vmem [shape: f32[64,512], index: 4, kind: input, shape index: {}]   ;;  %s3798_s5 = inlined_call_operand.vmem [shape: f32[64,256], index: 5, kind: input, shape index: {}]   ;;  %s3799_s6 = inlined_call_operand.vmem [shape: f32[1,512], index: 6, kind: input, shape index: {}]   ;;  %s3800_s7 = inlined_call_operand.vmem [shape: f32[64,128], index: 7, kind: input, shape index: {}]   ;;  %s3801_s8 = inlined_call_operand.vmem [shape: f32[1,128], index: 8, kind: input, shape index: {}]   ;;  %s3802_s9 = inlined_call_operand.vmem [shape: f32[8,128], index: 9, kind: output, shape index: {}]  }
   0x1   :  { %v41_v0 = vld [vmem:[%s3793_s1 + $0x8] sm:$0xff]  ;;  %v40_v2 = vld [vmem:[%s3793_s1] sm:$0xff]  ;;  %167 = vmatprep.mubr.f32.mxu0 %v3067_v3  ;;  %1346 = vmatprep.mubr.f32.mxu1 %v3067_v3  ;;  %v43_v12 = vld [vmem:[%s3793_s1 + $0x18] sm:$0xff]  ;;  %vm377_vm2 = vcmask 523264   ;;  %vm3070_vm3 = vmmov 0  }
   0x2   :  { %v45_v1 = vld [vmem:[%s3793_s1 + $0x28] sm:$0xff]  ;;  %v44_v5 = vld [vmem:[%s3793_s1 + $0x20] sm:$0xff]  ;;  %v47_v13 = vld [vmem:[%s3793_s1 + $0x38] sm:$0xff]  ;;  %v3310_v58 = vshrl.u32 %v58_v57, 7 }
   0x3   :  { %v2523_v4 = vpack.c.bf16 %v45_v1, %v41_v0  ;;  %v49_v6 = vld [vmem:[%s3793_s1 + $0x48] sm:$0xff]  ;;  %v2525_v8 = vpack.c.bf16 %v44_v5, %v40_v2  ;;  %v48_v10 = vld [vmem:[%s3793_s1 + $0x40] sm:$0xff]  ;;  %v2531_v15 = vpack.c.bf16 %v47_v13, %v43_v12  ;;  %v42_v16 = vld [vmem:[%s3793_s1 + $0x10] sm:$0xff] }
   0x4   :  { %v53_v7 = vld [vmem:[%s3793_s1 + $0x68] sm:$0xff]  ;;  %v52_v11 = vld [vmem:[%s3793_s1 + $0x60] sm:$0xff]  ;;  %v46_v17 = vld [vmem:[%s3793_s1 + $0x30] sm:$0xff]  ;;  %v60_v59 = vsub.s32 0, %v3310_v58  ;;  %v68_v60 = vsub.s32 2, %v3310_v58  ;;  %v64_v62 = vsub.s32 1, %v3310_v58 }
   0x5   :  { %v2527_v9 = vpack.c.bf16 %v53_v7, %v49_v6  ;;  %2524 = vmatprep.subr.bf16.mxu0 %v2523_v4  ;;  %v2529_v14 = vpack.c.bf16 %v52_v11, %v48_v10  ;;  %v51_v18 = vld [vmem:[%s3793_s1 + $0x58] sm:$0xff]  ;;  %v32_v20 = vld [vmem:[%s3794_s0] sm:$0xff]  ;;  %v2533_v21 = vpack.c.bf16 %v46_v17, %v42_v16  ;;  %v50_v23 = vld [vmem:[%s3793_s1 + $0x50] sm:$0xff]  ;;  %v72_v63 = vsub.s32 3, %v3310_v58 }
   0x6   :  { %2526 = vmatpush1.bf16.msra.mxu0 %v2525_v8  ;;  %v55_v19 = vld [vmem:[%s3793_s1 + $0x78] sm:$0xff]  ;;  %v54_v24 = vld [vmem:[%s3793_s1 + $0x70] sm:$0xff]  ;;  %v362_v25 = vld [vmem:[%s3795_s2 + $0x8] sm:$0xff] }
   0x7   :  { %2528 = vmatprep.subr.bf16.mxu0 %v2527_v9  ;;  %v2535_v22 = vpack.c.bf16 %v55_v19, %v51_v18  ;;  %v364_v26 = vld [vmem:[%s3795_s2 + $0x18] sm:$0xff]  ;;  %v33_v27 = vld [vmem:[%s3794_s0 + $0x8] sm:$0xff]  ;;  %v2537_v28 = vpack.c.bf16 %v54_v24, %v50_v23  ;;  %v34_v30 = vld [vmem:[%s3794_s0 + $0x10] sm:$0xff] }
   0x8   :  { %v3185_v29 = vpack.c.bf16 %v364_v26, %v362_v25  ;;  %v35_v31 = vld [vmem:[%s3794_s0 + $0x18] sm:$0xff]  ;;  %v36_v32 = vld [vmem:[%s3794_s0 + $0x20] sm:$0xff]  ;;  %v37_v33 = vld [vmem:[%s3794_s0 + $0x28] sm:$0xff] }
   0x9   :  { %v38_v34 = vld [vmem:[%s3794_s0 + $0x30] sm:$0xff]  ;;  %v39_v35 = vld [vmem:[%s3794_s0 + $0x38] sm:$0xff]  ;;  %v361_v36 = vld [vmem:[%s3795_s2] sm:$0xff] }
   0xa   :  { %2530 = vmatpush1.bf16.msra.mxu0 %v2529_v14  ;;  %v363_v37 = vld [vmem:[%s3795_s2 + $0x10] sm:$0xff]  ;;  %v366_v38 = vld [vmem:[%s3795_s2 + $0x28] sm:$0xff]  ;;  %v368_v39 = vld [vmem:[%s3795_s2 + $0x38] sm:$0xff] }
   0xb   :  { %2532 = vmatprep.subr.bf16.mxu0 %v2531_v15  ;;  %v3232_v40 = vpack.c.bf16 %v363_v37, %v361_v36  ;;  %v3234_v41 = vpack.c.bf16 %v368_v39, %v366_v38  ;;  %v365_v42 = vld [vmem:[%s3795_s2 + $0x20] sm:$0xff]  ;;  %v367_v43 = vld [vmem:[%s3795_s2 + $0x30] sm:$0xff]  ;;  %v370_v44 = vld [vmem:[%s3795_s2 + $0x48] sm:$0xff] }
   0xc   :  { %v372_v45 = vld [vmem:[%s3795_s2 + $0x58] sm:$0xff]  ;;  %v3251_v46 = vpack.c.bf16 %v367_v43, %v365_v42  ;;  %v369_v48 = vld [vmem:[%s3795_s2 + $0x40] sm:$0xff]  ;;  %v371_v49 = vld [vmem:[%s3795_s2 + $0x50] sm:$0xff] }
   0xd   :  { %2447 = vmatmul.mubr.msk.f32.vlgmr.msra.gmra.mrb[0].mxu0 %vm78_vm0, %v32_v20  ;;  %v3254_v47 = vpack.c.bf16 %v372_v45, %v370_v44  ;;  %v374_v50 = vld [vmem:[%s3795_s2 + $0x68] sm:$0xff]  ;;  %v376_v51 = vld [vmem:[%s3795_s2 + $0x78] sm:$0xff]  ;;  %v3271_v52 = vpack.c.bf16 %v371_v49, %v369_v48  ;;  %v373_v54 = vld [vmem:[%s3795_s2 + $0x60] sm:$0xff] }
   0xe   :  { %2534 = vmatpush1.bf16.msra.mxu0 %v2533_v21  ;;  %173 = vmatprep.mubr.f32.mxu0 %v3067_v3  ;;  %v3274_v53 = vpack.c.bf16 %v376_v51, %v374_v50  ;;  %v375_v55 = vld [vmem:[%s3795_s2 + $0x70] sm:$0xff]  ;;  %v56_v61 = vld [vmem:[%s3796_s3] sm:$0xf]  ;;  %s3068_s3 = smov 64  }
   0xf   :  { %2536 = vmatprep.subr.bf16.mxu0 %v2535_v22  ;;  %v3285_v56 = vpack.c.bf16 %v375_v55, %v373_v54  ;;  %v61_v0 = vrot.slane %v56_v61, %v60_v59  ;;  %v69_v1 = vrot.slane %v56_v61, %v68_v60  ;;  %v65_v2 = vrot.slane %v56_v61, %v64_v62 }
  0x10   :  { %v73_v4 = vrot.slane %v56_v61, %v72_v63 }
  0x11   :  { %2448 = vmatmul.mubr.msk.f32.gmra.mrb[2].mxu0 %vm78_vm0, %v33_v27  ;;  %v3327_v5 = vadd.f32 %v69_v1, %v61_v0 }
  0x12   :  { %179 = vmatprep.mubr.f32.mxu0 %v3067_v3  ;;  %2538 = vmatpush1.bf16.msra.mxu0 %v2537_v28  ;;  %v3329_v6 = vadd.f32 %v73_v4, %v65_v2 }
  0x13   :  { %2540 = vmatprep.subr.bf16.mxu0 %v3185_v29 }
  0x15   :  { %2449 = vmatmul.mubr.msk.f32.gmra.mrb[4].mxu0 %vm78_vm0, %v34_v30 }
  0x16   :  { %185 = vmatprep.mubr.f32.mxu0 %v3067_v3 }
  0x19   :  { %2450 = vmatmul.mubr.msk.f32.gmra.mrb[6].mxu0 %vm78_vm0, %v35_v31 }
  0x1a   :  { %191 = vmatprep.mubr.f32.mxu0 %v3067_v3 }
  0x1d   :  { %2451 = vmatmul.mubr.msk.f32.gmra.mrb[8].mxu0 %vm78_vm0, %v36_v32 }
  0x1e   :  { %197 = vmatprep.mubr.f32.mxu0 %v3067_v3 }
  0x21   :  { %2452 = vmatmul.mubr.msk.f32.gmra.mrb[10].mxu0 %vm78_vm0, %v37_v33 }
  0x22   :  { %203 = vmatprep.mubr.f32.mxu0 %v3067_v3 }
  0x25   :  { %2453 = vmatmul.mubr.msk.f32.gmra.mrb[12].mxu0 %vm78_vm0, %v38_v34 }
  0x26   :  { %209 = vmatprep.mubr.f32.mxu0 %v3067_v3 }
  0x29   :  { %2454 = vmatmul.mubr.msk.f32.gmra.mrb[14].mxu0 %vm78_vm0, %v39_v35 }
  0x2a   :  { %280 = vmatprep.mubr.f32.mxu0 %v3067_v3 }
  0x31   :  { %2455 = vmatmul.mubr.msk.f32.vlgmr.msra.gmra.mrb[14].mxu0 %vm78_vm0, %v32_v20 }
  0x32   :  { %2542 = vmatpush1.bf16.msra.mxu0 %v3232_v40  ;;  %286 = vmatprep.mubr.f32.mxu0 %v3067_v3 }
  0x33   :  { %2544 = vmatprep.subr.bf16.mxu0 %v3234_v41 }
  0x35   :  { %2456 = vmatmul.mubr.msk.f32.gmra.mrb[12].mxu0 %vm78_vm0, %v33_v27 }
  0x36   :  { %292 = vmatprep.mubr.f32.mxu0 %v3067_v3  ;;  %2546 = vmatpush1.bf16.msra.mxu0 %v3251_v46 }
  0x37   :  { %2548 = vmatprep.subr.bf16.mxu0 %v3254_v47 }
  0x39   :  { %2457 = vmatmul.mubr.msk.f32.gmra.mrb[10].mxu0 %vm78_vm0, %v34_v30 }
  0x3a   :  { %298 = vmatprep.mubr.f32.mxu0 %v3067_v3  ;;  %2550 = vmatpush1.bf16.msra.mxu0 %v3271_v52 }
  0x3b   :  { %2552 = vmatprep.subr.bf16.mxu0 %v3274_v53 }
  0x3d   :  { %2458 = vmatmul.mubr.msk.f32.gmra.mrb[8].mxu0 %vm78_vm0, %v35_v31 }
  0x3e   :  { %304 = vmatprep.mubr.f32.mxu0 %v3067_v3  ;;  %2554 = vmatpush1.bf16.msra.mxu0 %v3285_v56 }
  0x3f   :  { %2556 = vmatprep.subr.bf16.mxu0 %v3185_v29 }
  0x41   :  { %2459 = vmatmul.mubr.msk.f32.gmra.mrb[6].mxu0 %vm78_vm0, %v36_v32 }
  0x42   :  { %310 = vmatprep.mubr.f32.mxu0 %v3067_v3 }
  0x45   :  { %2460 = vmatmul.mubr.msk.f32.gmra.mrb[4].mxu0 %vm78_vm0, %v37_v33 }
  0x46   :  { %316 = vmatprep.mubr.f32.mxu0 %v3067_v3 }
  0x49   :  { %2461 = vmatmul.mubr.msk.f32.gmra.mrb[2].mxu0 %vm78_vm0, %v38_v34 }
  0x4a   :  { %322 = vmatprep.mubr.f32.mxu0 %v3067_v3 }
  0x4d   :  { %2462 = vmatmul.mubr.msk.f32.gmra.mrb[0].mxu0 %vm78_vm0, %v39_v35 }
  0x4e   :  { %445 = vmatprep.mubr.f32.mxu0 %v3067_v3 }
  0x55   :  { %446 = vmatmul.mubr.f32.vlgmr.msra.gmra.mrb[0].mxu0 %v3067_v3 }
  0x56   :  { %2558 = vmatpush1.bf16.msra.mxu0 %v3232_v40  ;;  %548 = vmatprep.mubr.f32.mxu0 %v3067_v3 }
  0x57   :  { %2560 = vmatprep.subr.bf16.mxu0 %v3234_v41 }
  0x5a   :  { %2562 = vmatpush1.bf16.msra.mxu0 %v3251_v46 }
  0x5b   :  { %2564 = vmatprep.subr.bf16.mxu0 %v3254_v47 }
  0x5e   :  { %2566 = vmatpush1.bf16.msra.mxu0 %v3271_v52 }
  0x5f   :  { %2568 = vmatprep.subr.bf16.mxu0 %v3274_v53 }
  0x62   :  { %2570 = vmatpush1.bf16.msra.mxu0 %v3285_v56 }
  0x63   :  { %2572 = vmatprep.subr.bf16.mxu0 %v3185_v29 }
 0x128   :  { %v447_v7 = vpop.f32.mrb[0].mxu0 }
 0x129   :  { %v2840_v8 = vadd.f32 %v3327_v5, %v447_v7  ;;  %v449_v9 = vpop.f32.mrb[1].mxu0 }
 0x12a   :  { %v2842_v10 = vadd.f32 %v3329_v6, %v449_v9 }
 0x12b   :  { %2971 = vtanh.f32 %v2840_v8 }
 0x12c   :  { %2973 = vtanh.f32 %v2842_v10 }
 0x135   :  { %v2972_v11 = vpop.eup %2971 }
 0x136   :  { %v462_v12 = vmul.f32 0.5, %v2972_v11  ;;  %v2974_v14 = vpop.eup %2973 }
 0x137   :  { %v464_v19 = vmul.f32 0.5, %v2974_v14 }
 0x138   :  { %v463_v13 = vadd.f32 0.5, %v462_v12 }
 0x139   :  { %v465_v20 = vadd.f32 0.5, %v464_v19 }
 0x13a   :  { %v467_v15 = vmul.f32 %v2974_v14, %v463_v13  ;;  %v466_v16 = vmul.f32 0.0, %v463_v13 }
 0x13c   :  { %469 = vrot.lane.b32.xlu0 %v467_v15, %s3068_s3 }
 0x1ae   :  { %v470_v17 = vpop.permute.xlu0 %469 }
 0x1af   :  { %v472_v18 = vadd.f32 %v470_v17, %v466_v16 }
 0x1b1   :  { %2975 = vtanh.f32 %v472_v18 }
 0x1bb   :  { %v2976_v21 = vpop.eup %2975 }
 0x1bc   :  { %v474_v22 = vmul.f32 %v2976_v21, %v465_v20 }
 0x1be   :  { %476 = vrot.lane.b32.xlu0 %v474_v22, %s3068_s3 }
 0x230   :  { %v477_v23 = vpop.permute.xlu0 %476 }
 0x231   :  { %479 = vst.msk [vmem:[#allocation3] sm:$0xff] %vm78_vm0, %v477_v23  ;;  %2463 = vmatmul.mubr.msk.f32.vlgmr.msra.gmra.mrb[2].mxu0 %vm377_vm2, %v477_v23 }
 0x232   :  { %481 = vst.msk [vmem:[#allocation3 + $0x38] sm:$0xff] %vm480_vm1, %v477_v23  ;;  %2574 = vmatpush1.bf16.msra.mxu0 %v3232_v40  ;;  %650 = vmatprep.mubr.f32.mxu0 %v3067_v3 }
 0x233   :  { %2576 = vmatprep.subr.bf16.mxu0 %v3234_v41 }
 0x236   :  { %2578 = vmatpush1.bf16.msra.mxu0 %v3251_v46 }
 0x237   :  { %2580 = vmatprep.subr.bf16.mxu0 %v3254_v47 }
 0x23a   :  { %2582 = vmatpush1.bf16.msra.mxu0 %v3271_v52 }
 0x23b   :  { %2584 = vmatprep.subr.bf16.mxu0 %v3274_v53 }
 0x23e   :  { %2586 = vmatpush1.bf16.msra.mxu0 %v3285_v56 }
 0x23f   :  { %2588 = vmatprep.subr.bf16.mxu0 %v3185_v29 }
 0x304   :  { %v550_v24 = vpop.f32.mrb[2].mxu0 }
 0x305   :  { %v2844_v25 = vadd.f32 %v3327_v5, %v550_v24  ;;  %v552_v26 = vpop.f32.mrb[3].mxu0 }
 0x306   :  { %v2846_v27 = vadd.f32 %v3329_v6, %v552_v26 }
 0x307   :  { %2977 = vtanh.f32 %v2844_v25 }
 0x308   :  { %2979 = vtanh.f32 %v2846_v27 }
 0x311   :  { %v2978_v28 = vpop.eup %2977 }
 0x312   :  { %v565_v30 = vmul.f32 0.5, %v2978_v28  ;;  %v2980_v32 = vpop.eup %2979 }
 0x313   :  { %v567_v37 = vmul.f32 0.5, %v2980_v32 }
 0x314   :  { %v566_v31 = vadd.f32 0.5, %v565_v30 }
 0x315   :  { %v568_v38 = vadd.f32 0.5, %v567_v37 }
 0x316   :  { %v570_v33 = vmul.f32 %v2980_v32, %v566_v31  ;;  %v569_v34 = vmul.f32 %v566_v31, %v472_v18 }
 0x318   :  { %572 = vrot.lane.b32.xlu1 %v570_v33, %s3068_s3 }
 0x38a   :  { %v573_v35 = vpop.permute.xlu1 %572 }
 0x38b   :  { %v575_v36 = vadd.f32 %v573_v35, %v569_v34 }
 0x38d   :  { %2981 = vtanh.f32 %v575_v36 }
 0x397   :  { %v2982_v39 = vpop.eup %2981 }
 0x398   :  { %v577_v42 = vmul.f32 %v2982_v39, %v568_v38 }
 0x39a   :  { %579 = vrot.lane.b32.xlu1 %v577_v42, %s3068_s3 }
 0x40c   :  { %v580_v43 = vpop.permute.xlu1 %579 }
 0x40d   :  { %582 = vst.msk [vmem:[#allocation3 + $0x8] sm:$0xff] %vm78_vm0, %v580_v43  ;;  %2464 = vmatmul.mubr.msk.f32.vlgmr.msra.gmra.mrb[4].mxu0 %vm377_vm2, %v580_v43 }
 0x40e   :  { %583 = vst.msk [vmem:[#allocation3 + $0x30] sm:$0xff] %vm480_vm1, %v580_v43  ;;  %2590 = vmatpush1.bf16.msra.mxu0 %v3232_v40  ;;  %752 = vmatprep.mubr.f32.mxu0 %v3067_v3 }
 0x40f   :  { %2592 = vmatprep.subr.bf16.mxu0 %v3234_v41 }
 0x412   :  { %2594 = vmatpush1.bf16.msra.mxu0 %v3251_v46 }
 0x413   :  { %2596 = vmatprep.subr.bf16.mxu0 %v3254_v47 }
 0x416   :  { %2598 = vmatpush1.bf16.msra.mxu0 %v3271_v52 }
 0x417   :  { %2600 = vmatprep.subr.bf16.mxu0 %v3274_v53 }
 0x41a   :  { %2602 = vmatpush1.bf16.msra.mxu0 %v3285_v56 }
 0x41b   :  { %2604 = vmatprep.subr.bf16.mxu0 %v3185_v29 }
 0x4e0   :  { %v652_v44 = vpop.f32.mrb[4].mxu0 }
 0x4e1   :  { %v2848_v45 = vadd.f32 %v3327_v5, %v652_v44  ;;  %v654_v48 = vpop.f32.mrb[5].mxu0 }
 0x4e2   :  { %v2850_v49 = vadd.f32 %v3329_v6, %v654_v48 }
 0x4e3   :  { %2983 = vtanh.f32 %v2848_v45 }
 0x4e4   :  { %2985 = vtanh.f32 %v2850_v49 }
 0x4ed   :  { %v2984_v50 = vpop.eup %2983 }
 0x4ee   :  { %v667_v51 = vmul.f32 0.5, %v2984_v50  ;;  %v2986_v55 = vpop.eup %2985 }
 0x4ef   :  { %v669_v2 = vmul.f32 0.5, %v2986_v55 }
 0x4f0   :  { %v668_v54 = vadd.f32 0.5, %v667_v51 }
 0x4f1   :  { %v670_v4 = vadd.f32 0.5, %v669_v2 }
 0x4f2   :  { %v672_v57 = vmul.f32 %v2986_v55, %v668_v54  ;;  %v671_v61 = vmul.f32 %v668_v54, %v575_v36 }
 0x4f4   :  { %674 = vrot.lane.b32.xlu0 %v672_v57, %s3068_s3 }
 0x566   :  { %v675_v0 = vpop.permute.xlu0 %674 }
 0x567   :  { %v677_v1 = vadd.f32 %v675_v0, %v671_v61 }
 0x569   :  { %2987 = vtanh.f32 %v677_v1 }
 0x573   :  { %v2988_v7 = vpop.eup %2987 }
 0x574   :  { %v679_v8 = vmul.f32 %v2988_v7, %v670_v4 }
 0x576   :  { %681 = vrot.lane.b32.xlu1 %v679_v8, %s3068_s3 }
 0x5e8   :  { %v682_v9 = vpop.permute.xlu1 %681 }
 0x5e9   :  { %684 = vst.msk [vmem:[#allocation3 + $0x10] sm:$0xff] %vm78_vm0, %v682_v9  ;;  %2465 = vmatmul.mubr.msk.f32.vlgmr.msra.gmra.mrb[6].mxu0 %vm377_vm2, %v682_v9 }
 0x5ea   :  { %685 = vst.msk [vmem:[#allocation3 + $0x28] sm:$0xff] %vm480_vm1, %v682_v9  ;;  %2606 = vmatpush1.bf16.msra.mxu0 %v3232_v40  ;;  %854 = vmatprep.mubr.f32.mxu0 %v3067_v3 }
 0x5eb   :  { %2608 = vmatprep.subr.bf16.mxu0 %v3234_v41 }
 0x5ee   :  { %2610 = vmatpush1.bf16.msra.mxu0 %v3251_v46 }
 0x5ef   :  { %2612 = vmatprep.subr.bf16.mxu0 %v3254_v47 }
 0x5f2   :  { %2614 = vmatpush1.bf16.msra.mxu0 %v3271_v52 }
 0x5f3   :  { %2616 = vmatprep.subr.bf16.mxu0 %v3274_v53 }
 0x5f6   :  { %2618 = vmatpush1.bf16.msra.mxu0 %v3285_v56 }
 0x5f7   :  { %2620 = vmatprep.subr.bf16.mxu0 %v3185_v29 }
 0x6bc   :  { %v754_v10 = vpop.f32.mrb[6].mxu0 }
 0x6bd   :  { %v2852_v11 = vadd.f32 %v3327_v5, %v754_v10  ;;  %v756_v12 = vpop.f32.mrb[7].mxu0 }
 0x6be   :  { %v2854_v13 = vadd.f32 %v3329_v6, %v756_v12 }
 0x6bf   :  { %2989 = vtanh.f32 %v2852_v11 }
 0x6c0   :  { %2991 = vtanh.f32 %v2854_v13 }
 0x6c9   :  { %v2990_v14 = vpop.eup %2989 }
 0x6ca   :  { %v769_v15 = vmul.f32 0.5, %v2990_v14  ;;  %v2992_v17 = vpop.eup %2991 }
 0x6cb   :  { %v771_v22 = vmul.f32 0.5, %v2992_v17 }
 0x6cc   :  { %v770_v16 = vadd.f32 0.5, %v769_v15 }
 0x6cd   :  { %v772_v23 = vadd.f32 0.5, %v771_v22 }
 0x6ce   :  { %v774_v18 = vmul.f32 %v2992_v17, %v770_v16  ;;  %v773_v19 = vmul.f32 %v770_v16, %v677_v1 }
 0x6d0   :  { %776 = vrot.lane.b32.xlu0 %v774_v18, %s3068_s3 }
 0x742   :  { %v777_v20 = vpop.permute.xlu0 %776 }
 0x743   :  { %v779_v21 = vadd.f32 %v777_v20, %v773_v19 }
 0x745   :  { %2993 = vtanh.f32 %v779_v21 }
 0x74f   :  { %v2994_v24 = vpop.eup %2993 }
 0x750   :  { %v781_v25 = vmul.f32 %v2994_v24, %v772_v23 }
 0x752   :  { %783 = vrot.lane.b32.xlu1 %v781_v25, %s3068_s3 }
 0x7c4   :  { %v784_v26 = vpop.permute.xlu1 %783 }
 0x7c5   :  { %786 = vst.msk [vmem:[#allocation3 + $0x18] sm:$0xff] %vm78_vm0, %v784_v26  ;;  %2466 = vmatmul.mubr.msk.f32.vlgmr.msra.gmra.mrb[8].mxu0 %vm377_vm2, %v784_v26 }
 0x7c6   :  { %787 = vst.msk [vmem:[#allocation3 + $0x20] sm:$0xff] %vm480_vm1, %v784_v26  ;;  %2622 = vmatpush1.bf16.msra.mxu0 %v3232_v40  ;;  %956 = vmatprep.mubr.f32.mxu0 %v3067_v3 }
 0x7c7   :  { %2624 = vmatprep.subr.bf16.mxu0 %v3234_v41 }
 0x7ca   :  { %2626 = vmatpush1.bf16.msra.mxu0 %v3251_v46 }
 0x7cb   :  { %2628 = vmatprep.subr.bf16.mxu0 %v3254_v47 }
 0x7ce   :  { %2630 = vmatpush1.bf16.msra.mxu0 %v3271_v52 }
 0x7cf   :  { %2632 = vmatprep.subr.bf16.mxu0 %v3274_v53 }
 0x7d2   :  { %2634 = vmatpush1.bf16.msra.mxu0 %v3285_v56 }
 0x7d3   :  { %2636 = vmatprep.subr.bf16.mxu0 %v3185_v29 }
 0x898   :  { %v856_v27 = vpop.f32.mrb[8].mxu0 }
 0x899   :  { %v2856_v28 = vadd.f32 %v3327_v5, %v856_v27  ;;  %v858_v30 = vpop.f32.mrb[9].mxu0 }
 0x89a   :  { %v2858_v31 = vadd.f32 %v3329_v6, %v858_v30 }
 0x89b   :  { %2995 = vtanh.f32 %v2856_v28 }
 0x89c   :  { %2997 = vtanh.f32 %v2858_v31 }
 0x8a5   :  { %v2996_v32 = vpop.eup %2995 }
 0x8a6   :  { %v871_v33 = vmul.f32 0.5, %v2996_v32  ;;  %v2998_v35 = vpop.eup %2997  ;;  %v1205_v32 = vld [vmem:[%s3797_s4 + $0x8] sm:$0xff] }
 0x8a7   :  { %v873_v42 = vmul.f32 0.5, %v2998_v35 }
 0x8a8   :  { %v872_v34 = vadd.f32 0.5, %v871_v33 }
 0x8a9   :  { %v874_v43 = vadd.f32 0.5, %v873_v42  ;;  %v1216_v42 = vld [vmem:[%s3797_s4 + $0x60] sm:$0xff] }
 0x8aa   :  { %v876_v36 = vmul.f32 %v2998_v35, %v872_v34  ;;  %v875_v37 = vmul.f32 %v872_v34, %v779_v21  ;;  %v1208_v34 = vld [vmem:[%s3797_s4 + $0x20] sm:$0xff]  ;;  %v1213_v35 = vld [vmem:[%s3797_s4 + $0x48] sm:$0xff] }
 0x8ac   :  { %878 = vrot.lane.b32.xlu0 %v876_v36, %s3068_s3  ;;  %v1217_v36 = vld [vmem:[%s3797_s4 + $0x68] sm:$0xff] }
 0x91e   :  { %v879_v38 = vpop.permute.xlu0 %878 }
 0x91f   :  { %v881_v39 = vadd.f32 %v879_v38, %v875_v37  ;;  %v2671_v38 = vpack.c.bf16 %v1217_v36, %v1213_v35 }
 0x921   :  { %2999 = vtanh.f32 %v881_v39 }
 0x92b   :  { %v3000_v44 = vpop.eup %2999 }
 0x92c   :  { %v883_v45 = vmul.f32 %v3000_v44, %v874_v43 }
 0x92e   :  { %885 = vrot.lane.b32.xlu1 %v883_v45, %s3068_s3 }
 0x9a0   :  { %v886_v48 = vpop.permute.xlu1 %885 }
 0x9a1   :  { %888 = vst.msk [vmem:[#allocation3 + $0x20] sm:$0xff] %vm78_vm0, %v886_v48  ;;  %2467 = vmatmul.mubr.msk.f32.vlgmr.msra.gmra.mrb[10].mxu0 %vm377_vm2, %v886_v48 }
 0x9a2   :  { %889 = vst.msk [vmem:[#allocation3 + $0x18] sm:$0xff] %vm480_vm1, %v886_v48  ;;  %2638 = vmatpush1.bf16.msra.mxu0 %v3232_v40  ;;  %1058 = vmatprep.mubr.f32.mxu0 %v3067_v3  ;;  %v1221_v48 = vld [vmem:[%s3797_s4 + $0x88] sm:$0xff] }
 0x9a3   :  { %2640 = vmatprep.subr.bf16.mxu0 %v3234_v41 }
 0x9a6   :  { %2642 = vmatpush1.bf16.msra.mxu0 %v3251_v46 }
 0x9a7   :  { %2644 = vmatprep.subr.bf16.mxu0 %v3254_v47 }
 0x9a8   :  { %v1200_v35 = vld [vmem:[#allocation3 + $0x20] sm:$0xff] }
 0x9aa   :  { %2646 = vmatpush1.bf16.msra.mxu0 %v3271_v52 }
 0x9ab   :  { %2648 = vmatprep.subr.bf16.mxu0 %v3274_v53 }
 0x9ae   :  { %2650 = vmatpush1.bf16.msra.mxu0 %v3285_v56 }
 0x9af   :  { %2652 = vmatprep.subr.bf16.mxu0 %v3185_v29 }
 0xa74   :  { %v958_v49 = vpop.f32.mrb[10].mxu0 }
 0xa75   :  { %v2860_v50 = vadd.f32 %v3327_v5, %v958_v49  ;;  %v960_v51 = vpop.f32.mrb[11].mxu0  ;;  %v1225_v49 = vld [vmem:[%s3797_s4 + $0xa8] sm:$0xff] }
 0xa76   :  { %v2862_v54 = vadd.f32 %v3329_v6, %v960_v51  ;;  %v2675_v51 = vpack.c.bf16 %v1225_v49, %v1221_v48  ;;  %v1544_v49 = vld [vmem:[%s3798_s5 + $0x20] sm:$0xff] }
 0xa77   :  { %3001 = vtanh.f32 %v2860_v50 }
 0xa78   :  { %3003 = vtanh.f32 %v2862_v54  ;;  %v1220_v54 = vld [vmem:[%s3797_s4 + $0x80] sm:$0xff] }
 0xa81   :  { %v3002_v55 = vpop.eup %3001 }
 0xa82   :  { %v973_v57 = vmul.f32 0.5, %v3002_v55  ;;  %v3004_v0 = vpop.eup %3003  ;;  %v1224_v55 = vld [vmem:[%s3797_s4 + $0xa0] sm:$0xff] }
 0xa83   :  { %v975_v29 = vmul.f32 0.5, %v3004_v0 }
 0xa84   :  { %v974_v61 = vadd.f32 0.5, %v973_v57  ;;  %v2677_v57 = vpack.c.bf16 %v1224_v55, %v1220_v54  ;;  %v1551_v54 = vld [vmem:[%s3798_s5 + $0x58] sm:$0xff] }
 0xa85   :  { %v976_v8 = vadd.f32 0.5, %v975_v29 }
 0xa86   :  { %v978_v1 = vmul.f32 %v3004_v0, %v974_v61  ;;  %v977_v2 = vmul.f32 %v974_v61, %v881_v39  ;;  %v1212_v39 = vld [vmem:[%s3797_s4 + $0x40] sm:$0xff]  ;;  %v1229_v61 = vld [vmem:[%s3797_s4 + $0xc8] sm:$0xff] }
 0xa87   :  { %v2673_v43 = vpack.c.bf16 %v1216_v42, %v1212_v39  ;;  %v1233_v0 = vld [vmem:[%s3797_s4 + $0xe8] sm:$0xff]  ;;  %v1540_v39 = vld [vmem:[%s3798_s5] sm:$0xff]  ;;  %v1542_v42 = vld [vmem:[%s3798_s5 + $0x10] sm:$0xff] }
 0xa88   :  { %980 = vrot.lane.b32.xlu0 %v978_v1, %s3068_s3  ;;  %v1228_v1 = vld [vmem:[%s3797_s4 + $0xc0] sm:$0xff] }
 0xafa   :  { %v981_v4 = vpop.permute.xlu0 %980 }
 0xafb   :  { %v983_v7 = vadd.f32 %v981_v4, %v977_v2  ;;  %v2679_v2 = vpack.c.bf16 %v1233_v0, %v1229_v61  ;;  %v1232_v4 = vld [vmem:[%s3797_s4 + $0xe0] sm:$0xff]  ;;  %v1550_v0 = vld [vmem:[%s3798_s5 + $0x50] sm:$0xff] }
 0xafc   :  { %v1548_v61 = vld [vmem:[%s3798_s5 + $0x40] sm:$0xff] }
 0xafd   :  { %3005 = vtanh.f32 %v983_v7 }
 0xb07   :  { %v3006_v9 = vpop.eup %3005 }
 0xb08   :  { %v985_v10 = vmul.f32 %v3006_v9, %v976_v8  ;;  %v1207_v8 = vld [vmem:[%s3797_s4 + $0x18] sm:$0xff] }
 0xb09   :  { %v1211_v9 = vld [vmem:[%s3797_s4 + $0x38] sm:$0xff] }
 0xb0a   :  { %987 = vrot.lane.b32.xlu1 %v985_v10, %s3068_s3 }
 0xb7c   :  { %v988_v11 = vpop.permute.xlu1 %987 }
 0xb7d   :  { %990 = vst.msk [vmem:[#allocation3 + $0x28] sm:$0xff] %vm78_vm0, %v988_v11  ;;  %2468 = vmatmul.mubr.msk.f32.vlgmr.msra.gmra.mrb[12].mxu0 %vm377_vm2, %v988_v11 }
 0xb7e   :  { %991 = vst.msk [vmem:[#allocation3 + $0x10] sm:$0xff] %vm480_vm1, %v988_v11  ;;  %2654 = vmatpush1.bf16.msra.mxu0 %v3232_v40  ;;  %1160 = vmatprep.mubr.f32.mxu0 %v3067_v3  ;;  %v2683_v11 = vpack.c.bf16 %v1211_v9, %v1207_v8  ;;  %v1554_v8 = vld [vmem:[%s3798_s5 + $0x70] sm:$0xff] }
 0xb7f   :  { %2656 = vmatprep.subr.bf16.mxu0 %v3234_v41 }
 0xb82   :  { %2658 = vmatpush1.bf16.msra.mxu0 %v3251_v46 }
 0xb83   :  { %2660 = vmatprep.subr.bf16.mxu0 %v3254_v47 }
 0xb84   :  { %v1201_v36 = vld [vmem:[#allocation3 + $0x28] sm:$0xff] }
 0xb86   :  { %2662 = vmatpush1.bf16.msra.mxu0 %v3271_v52 }
 0xb87   :  { %2664 = vmatprep.subr.bf16.mxu0 %v3274_v53 }
 0xb8a   :  { %2666 = vmatpush1.bf16.msra.mxu0 %v3285_v56 }
 0xc50   :  { %v1060_v12 = vpop.f32.mrb[12].mxu0 }
 0xc51   :  { %v2864_v13 = vadd.f32 %v3327_v5, %v1060_v12  ;;  %v1062_v14 = vpop.f32.mrb[13].mxu0 }
 0xc52   :  { %v2866_v40 = vadd.f32 %v3329_v6, %v1062_v14 }
 0xc53   :  { %3007 = vtanh.f32 %v2864_v13 }
 0xc54   :  { %3009 = vtanh.f32 %v2866_v40  ;;  %v1206_v40 = vld [vmem:[%s3797_s4 + $0x10] sm:$0xff] }
 0xc5d   :  { %v3008_v15 = vpop.eup %3007 }
 0xc5e   :  { %v1075_v41 = vmul.f32 0.5, %v3008_v15  ;;  %v3010_v46 = vpop.eup %3009  ;;  %v1210_v15 = vld [vmem:[%s3797_s4 + $0x30] sm:$0xff] }
 0xc5f   :  { %v1077_v56 = vmul.f32 0.5, %v3010_v46 }
 0xc60   :  { %v1076_v16 = vadd.f32 0.5, %v1075_v41  ;;  %v1215_v41 = vld [vmem:[%s3797_s4 + $0x58] sm:$0xff] }
 0xc61   :  { %v1078_v18 = vadd.f32 0.5, %v1077_v56  ;;  %v1223_v56 = vld [vmem:[%s3797_s4 + $0x98] sm:$0xff] }
 0xc62   :  { %v1080_v17 = vmul.f32 %v3010_v46, %v1076_v16  ;;  %v1079_v47 = vmul.f32 %v1076_v16, %v983_v7  ;;  %v2681_v7 = vpack.c.bf16 %v1232_v4, %v1228_v1  ;;  %v1219_v16 = vld [vmem:[%s3797_s4 + $0x78] sm:$0xff]  ;;  %v2685_v46 = vpack.c.bf16 %v1210_v15, %v1206_v40  ;;  %v1553_v1 = vld [vmem:[%s3798_s5 + $0x68] sm:$0xff] }
 0xc63   :  { %v3611_v4 = vpack.c.bf16 %v1550_v0, %v1548_v61 }
 0xc64   :  { %1082 = vrot.lane.b32.xlu0 %v1080_v17, %s3068_s3  ;;  %v2687_v17 = vpack.c.bf16 %v1219_v16, %v1215_v41 }
 0xcd6   :  { %v1083_v52 = vpop.permute.xlu0 %1082 }
 0xcd7   :  { %v1085_v53 = vadd.f32 %v1083_v52, %v1079_v47  ;;  %v1214_v47 = vld [vmem:[%s3797_s4 + $0x50] sm:$0xff] }
 0xcd8   :  { %v1218_v52 = vld [vmem:[%s3797_s4 + $0x70] sm:$0xff] }
 0xcd9   :  { %3011 = vtanh.f32 %v1085_v53 }
 0xce3   :  { %v3012_v19 = vpop.eup %3011 }
 0xce4   :  { %v1087_v20 = vmul.f32 %v3012_v19, %v1078_v18  ;;  %v1227_v18 = vld [vmem:[%s3797_s4 + $0xb8] sm:$0xff]  ;;  %v2689_v19 = vpack.c.bf16 %v1218_v52, %v1214_v47 }
 0xce6   :  { %1089 = vrot.lane.b32.xlu1 %v1087_v20, %s3068_s3  ;;  %v2691_v20 = vpack.c.bf16 %v1227_v18, %v1223_v56 }
 0xd58   :  { %v1090_v21 = vpop.permute.xlu1 %1089 }
 0xd59   :  { %1092 = vst.msk [vmem:[#allocation3 + $0x30] sm:$0xff] %vm78_vm0, %v1090_v21  ;;  %2469 = vmatmul.mubr.msk.f32.vlgmr.msra.gmra.mrb[14].mxu0 %vm377_vm2, %v1090_v21 }
 0xd5a   :  { %1093 = vst.msk [vmem:[#allocation3 + $0x8] sm:$0xff] %vm480_vm1, %v1090_v21  ;;  %v1222_v21 = vld [vmem:[%s3797_s4 + $0x90] sm:$0xff]  ;;  %2520 = vmatprep.mubr.msk.f32.mxu0 %vm3070_vm3, %v3067_v3 }
 0xe2c   :  { %v1162_v22 = vpop.f32.mrb[14].mxu0 }
 0xe2d   :  { %v2868_v23 = vadd.f32 %v3327_v5, %v1162_v22  ;;  %v1164_v24 = vpop.f32.mrb[15].mxu0  ;;  %v1209_v5 = vld [vmem:[%s3797_s4 + $0x28] sm:$0xff]  ;;  %v1226_v22 = vld [vmem:[%s3797_s4 + $0xb0] sm:$0xff] }
 0xe2e   :  { %v2870_v25 = vadd.f32 %v3329_v6, %v1164_v24  ;;  %v1204_v6 = vld [vmem:[%s3797_s4] sm:$0xff]  ;;  %v2667_v33 = vpack.c.bf16 %v1209_v5, %v1205_v32  ;;  %v1231_v24 = vld [vmem:[%s3797_s4 + $0xd8] sm:$0xff]  ;;  %v1541_v32 = vld [vmem:[%s3798_s5 + $0x8] sm:$0xff] }
 0xe2f   :  { %3013 = vtanh.f32 %v2868_v23  ;;  %v2669_v37 = vpack.c.bf16 %v1208_v34, %v1204_v6  ;;  %v1197_v23 = vld [vmem:[#allocation3 + $0x8] sm:$0xff]  ;;  %v1543_v5 = vld [vmem:[%s3798_s5 + $0x18] sm:$0xff] }
 0xe30   :  { %3015 = vtanh.f32 %v2870_v25  ;;  %2668 = vmatprep.subr.bf16.mxu1 %v2667_v33  ;;  %v1235_v25 = vld [vmem:[%s3797_s4 + $0xf8] sm:$0xff]  ;;  %v3547_v33 = vpack.c.bf16 %v1543_v5, %v1541_v32 }
 0xe31   :  { %2670 = vmatpush1.bf16.msra.mxu1 %v2669_v37  ;;  %v1199_v34 = vld [vmem:[#allocation3 + $0x18] sm:$0xff]  ;;  %v1202_v37 = vld [vmem:[#allocation3 + $0x30] sm:$0xff] }
 0xe32   :  { %2672 = vmatprep.subr.bf16.mxu1 %v2671_v38 }
 0xe35   :  { %2674 = vmatpush1.bf16.msra.mxu1 %v2673_v43  ;;  %v1545_v43 = vld [vmem:[%s3798_s5 + $0x28] sm:$0xff] }
 0xe36   :  { %2676 = vmatprep.subr.bf16.mxu1 %v2675_v51  ;;  %v1549_v51 = vld [vmem:[%s3798_s5 + $0x48] sm:$0xff] }
 0xe39   :  { %v3014_v26 = vpop.eup %3013  ;;  %2678 = vmatpush1.bf16.msra.mxu1 %v2677_v57  ;;  %v3594_v57 = vpack.c.bf16 %v1551_v54, %v1549_v51 }
 0xe3a   :  { %v1177_v27 = vmul.f32 0.5, %v3014_v26  ;;  %v3016_v30 = vpop.eup %3015  ;;  %2680 = vmatprep.subr.bf16.mxu1 %v2679_v2  ;;  %v2693_v26 = vpack.c.bf16 %v1226_v22, %v1222_v21  ;;  %v1555_v2 = vld [vmem:[%s3798_s5 + $0x78] sm:$0xff] }
 0xe3b   :  { %v1179_v29 = vmul.f32 0.5, %v3016_v30 }
 0xe3c   :  { %v1178_v28 = vadd.f32 0.5, %v1177_v27  ;;  %v2695_v27 = vpack.c.bf16 %v1235_v25, %v1231_v24 }
 0xe3d   :  { %2682 = vmatpush1.bf16.msra.mxu1 %v2681_v7  ;;  %v1180_v10 = vadd.f32 0.5, %v1179_v29  ;;  %v3614_v7 = vpack.c.bf16 %v1555_v2, %v1553_v1  ;;  %v1552_v29 = vld [vmem:[%s3798_s5 + $0x60] sm:$0xff] }
 0xe3e   :  { %v1182_v31 = vmul.f32 %v3016_v30, %v1178_v28  ;;  %v1181_v44 = vmul.f32 %v1178_v28, %v1085_v53  ;;  %2684 = vmatprep.subr.bf16.mxu1 %v2683_v11  ;;  %v1230_v28 = vld [vmem:[%s3797_s4 + $0xd0] sm:$0xff]  ;;  %v3625_v9 = vpack.c.bf16 %v1554_v8, %v1552_v29 }
 0xe3f   :  { %v1234_v30 = vld [vmem:[%s3797_s4 + $0xf0] sm:$0xff] }
 0xe40   :  { %1184 = vrot.lane.b32.xlu0 %v1182_v31, %s3068_s3  ;;  %v1198_v31 = vld [vmem:[#allocation3 + $0x10] sm:$0xff]  ;;  %v2697_v6 = vpack.c.bf16 %v1234_v30, %v1230_v28 }
 0xeb2   :  { %v1185_v45 = vpop.permute.xlu0 %1184 }
 0xeb3   :  { %v1187_v50 = vadd.f32 %v1185_v45, %v1181_v44  ;;  %v1547_v44 = vld [vmem:[%s3798_s5 + $0x38] sm:$0xff]  ;;  %v3572_v45 = vpack.c.bf16 %v1542_v42, %v1540_v39 }
 0xeb4   :  { %v3574_v48 = vpack.c.bf16 %v1547_v44, %v1545_v43 }
 0xeb5   :  { %3017 = vtanh.f32 %v1187_v50  ;;  %v1546_v50 = vld [vmem:[%s3798_s5 + $0x30] sm:$0xff] }
 0xeb6   :  { %v3591_v55 = vpack.c.bf16 %v1546_v50, %v1544_v49 }
 0xebf   :  { %v3018_v12 = vpop.eup %3017 }
 0xec0   :  { %v1189_v13 = vmul.f32 %v3018_v12, %v1180_v10  ;;  %v1236_v10 = vld [vmem:[%s3799_s6] sm:$0xf] }
 0xec1   :  { %v1241_v11 = vrot.slane %v1236_v10, %v60_v59  ;;  %v1249_v12 = vrot.slane %v1236_v10, %v68_v60 }
 0xec2   :  { %1191 = vrot.lane.b32.xlu1 %v1189_v13, %s3068_s3  ;;  %v1245_v13 = vrot.slane %v1236_v10, %v64_v62 }
 0xec3   :  { %v3661_v40 = vadd.f32 %v1249_v12, %v1241_v11 }
 0xf34   :  { %v1192_v14 = vpop.permute.xlu1 %1191 }
 0xf35   :  { %1194 = vst.msk [vmem:[#allocation3 + $0x38] sm:$0xff] %vm78_vm0, %v1192_v14 }
 0xf36   :  { %1195 = vst.msk [vmem:[#allocation3] sm:$0xff] %vm480_vm1, %v1192_v14  ;;  %v1253_v14 = vrot.slane %v1236_v10, %v72_v63 }
 0xf38   :  { %v3663_v15 = vadd.f32 %v1253_v14, %v1245_v13 }
 0xf3c   :  { %v1203_v38 = vld [vmem:[#allocation3 + $0x38] sm:$0xff] }
 0xf3d   :  { %v1196_v53 = vld [vmem:[#allocation3] sm:$0xff] }
 0xf3e   :  { %2470 = vmatmul.mubr.msk.f32.vlgmr.msra.gmra.mrb[0].mxu1 %vm377_vm2, %v1196_v53 }
 0xf3f   :  { %2686 = vmatpush1.bf16.msra.mxu1 %v2685_v46  ;;  %1352 = vmatprep.mubr.f32.mxu1 %v3067_v3 }
 0xf40   :  { %2688 = vmatprep.subr.bf16.mxu1 %v2687_v17 }
 0xf42   :  { %2471 = vmatmul.mubr.msk.f32.gmra.mrb[2].mxu1 %vm377_vm2, %v1197_v23 }
 0xf43   :  { %1358 = vmatprep.mubr.f32.mxu1 %v3067_v3  ;;  %2690 = vmatpush1.bf16.msra.mxu1 %v2689_v19 }
 0xf44   :  { %2692 = vmatprep.subr.bf16.mxu1 %v2691_v20 }
 0xf46   :  { %2472 = vmatmul.mubr.msk.f32.gmra.mrb[4].mxu1 %vm377_vm2, %v1198_v31 }
 0xf47   :  { %1364 = vmatprep.mubr.f32.mxu1 %v3067_v3  ;;  %2694 = vmatpush1.bf16.msra.mxu1 %v2693_v26 }
 0xf48   :  { %2696 = vmatprep.subr.bf16.mxu1 %v2695_v27 }
 0xf4a   :  { %2473 = vmatmul.mubr.msk.f32.gmra.mrb[6].mxu1 %vm377_vm2, %v1199_v34 }
 0xf4b   :  { %1370 = vmatprep.mubr.f32.mxu1 %v3067_v3  ;;  %2698 = vmatpush1.bf16.msra.mxu1 %v2697_v6 }
 0xf4c   :  { %2700 = vmatprep.subr.bf16.mxu1 %v3547_v33 }
 0xf4e   :  { %2474 = vmatmul.mubr.msk.f32.gmra.mrb[8].mxu1 %vm377_vm2, %v1200_v35 }
 0xf4f   :  { %1376 = vmatprep.mubr.f32.mxu1 %v3067_v3 }
 0xf52   :  { %2475 = vmatmul.mubr.msk.f32.gmra.mrb[10].mxu1 %vm377_vm2, %v1201_v36 }
 0xf53   :  { %1382 = vmatprep.mubr.f32.mxu1 %v3067_v3 }
 0xf56   :  { %2476 = vmatmul.mubr.msk.f32.gmra.mrb[12].mxu1 %vm377_vm2, %v1202_v37 }
 0xf57   :  { %1388 = vmatprep.mubr.f32.mxu1 %v3067_v3 }
 0xf5a   :  { %2477 = vmatmul.mubr.msk.f32.gmra.mrb[14].mxu1 %vm377_vm2, %v1203_v38 }
 0xf5b   :  { %1459 = vmatprep.mubr.f32.mxu1 %v3067_v3 }
 0xf62   :  { %2478 = vmatmul.mubr.msk.f32.vlgmr.msra.gmra.mrb[14].mxu1 %vm377_vm2, %v1196_v53 }
 0xf63   :  { %2702 = vmatpush1.bf16.msra.mxu1 %v3572_v45  ;;  %1465 = vmatprep.mubr.f32.mxu1 %v3067_v3 }
 0xf64   :  { %2704 = vmatprep.subr.bf16.mxu1 %v3574_v48 }
 0xf66   :  { %2479 = vmatmul.mubr.msk.f32.gmra.mrb[12].mxu1 %vm377_vm2, %v1197_v23 }
 0xf67   :  { %1471 = vmatprep.mubr.f32.mxu1 %v3067_v3  ;;  %2706 = vmatpush1.bf16.msra.mxu1 %v3591_v55 }
 0xf68   :  { %2708 = vmatprep.subr.bf16.mxu1 %v3594_v57 }
 0xf6a   :  { %2480 = vmatmul.mubr.msk.f32.gmra.mrb[10].mxu1 %vm377_vm2, %v1198_v31 }
 0xf6b   :  { %1477 = vmatprep.mubr.f32.mxu1 %v3067_v3  ;;  %2710 = vmatpush1.bf16.msra.mxu1 %v3611_v4 }
 0xf6c   :  { %2712 = vmatprep.subr.bf16.mxu1 %v3614_v7 }
 0xf6e   :  { %2481 = vmatmul.mubr.msk.f32.gmra.mrb[8].mxu1 %vm377_vm2, %v1199_v34 }
 0xf6f   :  { %1483 = vmatprep.mubr.f32.mxu1 %v3067_v3  ;;  %2714 = vmatpush1.bf16.msra.mxu1 %v3625_v9 }
 0xf70   :  { %2716 = vmatprep.subr.bf16.mxu1 %v3547_v33 }
 0xf72   :  { %2482 = vmatmul.mubr.msk.f32.gmra.mrb[6].mxu1 %vm377_vm2, %v1200_v35 }
 0xf73   :  { %1489 = vmatprep.mubr.f32.mxu1 %v3067_v3 }
 0xf76   :  { %2483 = vmatmul.mubr.msk.f32.gmra.mrb[4].mxu1 %vm377_vm2, %v1201_v36 }
 0xf77   :  { %1495 = vmatprep.mubr.f32.mxu1 %v3067_v3 }
 0xf7a   :  { %2484 = vmatmul.mubr.msk.f32.gmra.mrb[2].mxu1 %vm377_vm2, %v1202_v37 }
 0xf7b   :  { %1501 = vmatprep.mubr.f32.mxu1 %v3067_v3 }
 0xf7e   :  { %2485 = vmatmul.mubr.msk.f32.gmra.mrb[0].mxu1 %vm377_vm2, %v1203_v38 }
 0xf7f   :  { %1620 = vmatprep.mubr.f32.mxu1 %v3067_v3 }
 0xf86   :  { %1621 = vmatmul.mubr.f32.vlgmr.msra.gmra.mrb[0].mxu1 %v3067_v3 }
 0xf87   :  { %2718 = vmatpush1.bf16.msra.mxu1 %v3572_v45  ;;  %1720 = vmatprep.mubr.f32.mxu1 %v3067_v3 }
 0xf88   :  { %2720 = vmatprep.subr.bf16.mxu1 %v3574_v48 }
 0xf8b   :  { %2722 = vmatpush1.bf16.msra.mxu1 %v3591_v55 }
 0xf8c   :  { %2724 = vmatprep.subr.bf16.mxu1 %v3594_v57 }
 0xf8f   :  { %2726 = vmatpush1.bf16.msra.mxu1 %v3611_v4 }
 0xf90   :  { %2728 = vmatprep.subr.bf16.mxu1 %v3614_v7 }
 0xf93   :  { %2730 = vmatpush1.bf16.msra.mxu1 %v3625_v9 }
 0xf94   :  { %2732 = vmatprep.subr.bf16.mxu1 %v3547_v33 }
0x1059   :  { %v1622_v41 = vpop.f32.mrb[0].mxu1 }
0x105a   :  { %v2872_v16 = vadd.f32 %v3661_v40, %v1622_v41  ;;  %v1624_v46 = vpop.f32.mrb[1].mxu1 }
0x105b   :  { %v2874_v59 = vadd.f32 %v3663_v15, %v1624_v46 }
0x105c   :  { %3019 = vtanh.f32 %v2872_v16 }
0x105d   :  { %3021 = vtanh.f32 %v2874_v59 }
0x1066   :  { %v3020_v17 = vpop.eup %3019 }
0x1067   :  { %v1637_v60 = vmul.f32 0.5, %v3020_v17  ;;  %v3022_v52 = vpop.eup %3021 }
0x1068   :  { %v1639_v56 = vmul.f32 0.5, %v3022_v52 }
0x1069   :  { %v1638_v47 = vadd.f32 0.5, %v1637_v60 }
0x106a   :  { %v1640_v18 = vadd.f32 0.5, %v1639_v56 }
0x106b   :  { %v1642_v62 = vmul.f32 %v3022_v52, %v1638_v47  ;;  %v1641_v58 = vmul.f32 0.0, %v1638_v47 }
0x106d   :  { %1644 = vrot.lane.b32.xlu0 %v1642_v62, %s3068_s3 }
0x10df   :  { %v1645_v63 = vpop.permute.xlu0 %1644 }
0x10e0   :  { %v1647_v53 = vadd.f32 %v1645_v63, %v1641_v58 }
0x10e2   :  { %3023 = vtanh.f32 %v1647_v53 }
0x10ec   :  { %v3024_v19 = vpop.eup %3023 }
0x10ed   :  { %v3668_v20 = vmul.f32 %v3024_v19, %v1640_v18 }
0x10ef   :  { %1652 = vrot.lane.b32.xlu1 %v3668_v20, %s3068_s3 }
0x1161   :  { %v1653_v21 = vpop.permute.xlu1 %1652 }
0x1162   :  { %2486 = vmatmul.mubr.msk.f32.vlgmr.msra.gmra.mrb[2].mxu1 %vm377_vm2, %v1653_v21 }
0x1163   :  { %2734 = vmatpush1.bf16.msra.mxu1 %v3572_v45  ;;  %1820 = vmatprep.mubr.f32.mxu1 %v3067_v3 }
0x1164   :  { %2736 = vmatprep.subr.bf16.mxu1 %v3574_v48 }
0x1167   :  { %2738 = vmatpush1.bf16.msra.mxu1 %v3591_v55 }
0x1168   :  { %2740 = vmatprep.subr.bf16.mxu1 %v3594_v57 }
0x116b   :  { %2742 = vmatpush1.bf16.msra.mxu1 %v3611_v4 }
0x116c   :  { %2744 = vmatprep.subr.bf16.mxu1 %v3614_v7 }
0x116f   :  { %2746 = vmatpush1.bf16.msra.mxu1 %v3625_v9 }
0x1170   :  { %2748 = vmatprep.subr.bf16.mxu1 %v3547_v33 }
0x1235   :  { %v1722_v22 = vpop.f32.mrb[2].mxu1 }
0x1236   :  { %v2876_v23 = vadd.f32 %v3661_v40, %v1722_v22  ;;  %v1724_v24 = vpop.f32.mrb[3].mxu1 }
0x1237   :  { %v2878_v25 = vadd.f32 %v3663_v15, %v1724_v24 }
0x1238   :  { %3025 = vtanh.f32 %v2876_v23 }
0x1239   :  { %3027 = vtanh.f32 %v2878_v25 }
0x1242   :  { %v3026_v26 = vpop.eup %3025 }
0x1243   :  { %v1737_v27 = vmul.f32 0.5, %v3026_v26  ;;  %v3028_v30 = vpop.eup %3027 }
0x1244   :  { %v1739_v34 = vmul.f32 0.5, %v3028_v30 }
0x1245   :  { %v1738_v28 = vadd.f32 0.5, %v1737_v27 }
0x1246   :  { %v1740_v35 = vadd.f32 0.5, %v1739_v34 }
0x1247   :  { %v1742_v31 = vmul.f32 %v3028_v30, %v1738_v28  ;;  %v1741_v32 = vmul.f32 %v1738_v28, %v1647_v53 }
0x1249   :  { %1744 = vrot.lane.b32.xlu0 %v1742_v31, %s3068_s3 }
0x12bb   :  { %v1745_v5 = vpop.permute.xlu0 %1744 }
0x12bc   :  { %v1747_v6 = vadd.f32 %v1745_v5, %v1741_v32 }
0x12be   :  { %3029 = vtanh.f32 %v1747_v6 }
0x12c8   :  { %v3030_v36 = vpop.eup %3029 }
0x12c9   :  { %v1749_v37 = vmul.f32 %v3030_v36, %v1740_v35 }
0x12cb   :  { %1752 = vrot.lane.b32.xlu1 %v1749_v37, %s3068_s3  ;;  %v1750_v11 = vadd.f32 %v1749_v37, %v3668_v20 }
0x133d   :  { %v1753_v38 = vpop.permute.xlu1 %1752 }
0x133e   :  { %2487 = vmatmul.mubr.msk.f32.vlgmr.msra.gmra.mrb[4].mxu1 %vm377_vm2, %v1753_v38 }
0x133f   :  { %2750 = vmatpush1.bf16.msra.mxu1 %v3572_v45  ;;  %1920 = vmatprep.mubr.f32.mxu1 %v3067_v3 }
0x1340   :  { %2752 = vmatprep.subr.bf16.mxu1 %v3574_v48 }
0x1343   :  { %2754 = vmatpush1.bf16.msra.mxu1 %v3591_v55 }
0x1344   :  { %2756 = vmatprep.subr.bf16.mxu1 %v3594_v57 }
0x1347   :  { %2758 = vmatpush1.bf16.msra.mxu1 %v3611_v4 }
0x1348   :  { %2760 = vmatprep.subr.bf16.mxu1 %v3614_v7 }
0x134b   :  { %2762 = vmatpush1.bf16.msra.mxu1 %v3625_v9 }
0x134c   :  { %2764 = vmatprep.subr.bf16.mxu1 %v3547_v33 }
0x1411   :  { %v1822_v39 = vpop.f32.mrb[4].mxu1 }
0x1412   :  { %v2880_v42 = vadd.f32 %v3661_v40, %v1822_v39  ;;  %v1824_v43 = vpop.f32.mrb[5].mxu1 }
0x1413   :  { %v2882_v44 = vadd.f32 %v3663_v15, %v1824_v43 }
0x1414   :  { %3031 = vtanh.f32 %v2880_v42 }
0x1415   :  { %3033 = vtanh.f32 %v2882_v44 }
0x141e   :  { %v3032_v49 = vpop.eup %3031 }
0x141f   :  { %v1837_v50 = vmul.f32 0.5, %v3032_v49  ;;  %v3034_v54 = vpop.eup %3033 }
0x1420   :  { %v1839_v29 = vmul.f32 0.5, %v3034_v54 }
0x1421   :  { %v1838_v51 = vadd.f32 0.5, %v1837_v50 }
0x1422   :  { %v1840_v8 = vadd.f32 0.5, %v1839_v29 }
0x1423   :  { %v1842_v61 = vmul.f32 %v3034_v54, %v1838_v51  ;;  %v1841_v0 = vmul.f32 %v1838_v51, %v1747_v6 }
0x1425   :  { %1844 = vrot.lane.b32.xlu0 %v1842_v61, %s3068_s3 }
0x1497   :  { %v1845_v1 = vpop.permute.xlu0 %1844 }
0x1498   :  { %v1847_v2 = vadd.f32 %v1845_v1, %v1841_v0 }
0x149a   :  { %3035 = vtanh.f32 %v1847_v2 }
0x14a4   :  { %v3036_v10 = vpop.eup %3035 }
0x14a5   :  { %v1849_v12 = vmul.f32 %v3036_v10, %v1840_v8 }
0x14a7   :  { %1852 = vrot.lane.b32.xlu1 %v1849_v12, %s3068_s3  ;;  %v1850_v13 = vadd.f32 %v1849_v12, %v1750_v11 }
0x1519   :  { %v1853_v14 = vpop.permute.xlu1 %1852 }
0x151a   :  { %2488 = vmatmul.mubr.msk.f32.vlgmr.msra.gmra.mrb[6].mxu1 %vm377_vm2, %v1853_v14 }
0x151b   :  { %2766 = vmatpush1.bf16.msra.mxu1 %v3572_v45  ;;  %2020 = vmatprep.mubr.f32.mxu1 %v3067_v3 }
0x151c   :  { %2768 = vmatprep.subr.bf16.mxu1 %v3574_v48 }
0x151f   :  { %2770 = vmatpush1.bf16.msra.mxu1 %v3591_v55 }
0x1520   :  { %2772 = vmatprep.subr.bf16.mxu1 %v3594_v57 }
0x1523   :  { %2774 = vmatpush1.bf16.msra.mxu1 %v3611_v4 }
0x1524   :  { %2776 = vmatprep.subr.bf16.mxu1 %v3614_v7 }
0x1527   :  { %2778 = vmatpush1.bf16.msra.mxu1 %v3625_v9 }
0x1528   :  { %2780 = vmatprep.subr.bf16.mxu1 %v3547_v33 }
0x15ed   :  { %v1922_v41 = vpop.f32.mrb[6].mxu1 }
0x15ee   :  { %v2884_v16 = vadd.f32 %v3661_v40, %v1922_v41  ;;  %v1924_v46 = vpop.f32.mrb[7].mxu1 }
0x15ef   :  { %v2886_v59 = vadd.f32 %v3663_v15, %v1924_v46 }
0x15f0   :  { %3037 = vtanh.f32 %v2884_v16 }
0x15f1   :  { %3039 = vtanh.f32 %v2886_v59 }
0x15fa   :  { %v3038_v17 = vpop.eup %3037 }
0x15fb   :  { %v1937_v60 = vmul.f32 0.5, %v3038_v17  ;;  %v3040_v52 = vpop.eup %3039 }
0x15fc   :  { %v1939_v56 = vmul.f32 0.5, %v3040_v52 }
0x15fd   :  { %v1938_v47 = vadd.f32 0.5, %v1937_v60 }
0x15fe   :  { %v1940_v18 = vadd.f32 0.5, %v1939_v56 }
0x15ff   :  { %v1942_v62 = vmul.f32 %v3040_v52, %v1938_v47  ;;  %v1941_v58 = vmul.f32 %v1938_v47, %v1847_v2 }
0x1601   :  { %1944 = vrot.lane.b32.xlu0 %v1942_v62, %s3068_s3 }
0x1673   :  { %v1945_v63 = vpop.permute.xlu0 %1944 }
0x1674   :  { %v1947_v53 = vadd.f32 %v1945_v63, %v1941_v58 }
0x1676   :  { %3041 = vtanh.f32 %v1947_v53 }
0x1680   :  { %v3042_v19 = vpop.eup %3041 }
0x1681   :  { %v1949_v20 = vmul.f32 %v3042_v19, %v1940_v18 }
0x1683   :  { %1952 = vrot.lane.b32.xlu1 %v1949_v20, %s3068_s3  ;;  %v1950_v21 = vadd.f32 %v1949_v20, %v1850_v13 }
0x16f5   :  { %v1953_v22 = vpop.permute.xlu1 %1952 }
0x16f6   :  { %2489 = vmatmul.mubr.msk.f32.vlgmr.msra.gmra.mrb[8].mxu1 %vm377_vm2, %v1953_v22 }
0x16f7   :  { %2782 = vmatpush1.bf16.msra.mxu1 %v3572_v45  ;;  %2120 = vmatprep.mubr.f32.mxu1 %v3067_v3 }
0x16f8   :  { %2784 = vmatprep.subr.bf16.mxu1 %v3574_v48 }
0x16fb   :  { %2786 = vmatpush1.bf16.msra.mxu1 %v3591_v55 }
0x16fc   :  { %2788 = vmatprep.subr.bf16.mxu1 %v3594_v57 }
0x16ff   :  { %2790 = vmatpush1.bf16.msra.mxu1 %v3611_v4 }
0x1700   :  { %2792 = vmatprep.subr.bf16.mxu1 %v3614_v7 }
0x1703   :  { %2794 = vmatpush1.bf16.msra.mxu1 %v3625_v9 }
0x1704   :  { %2796 = vmatprep.subr.bf16.mxu1 %v3547_v33 }
0x17c9   :  { %v2022_v23 = vpop.f32.mrb[8].mxu1 }
0x17ca   :  { %v2888_v24 = vadd.f32 %v3661_v40, %v2022_v23  ;;  %v2024_v25 = vpop.f32.mrb[9].mxu1 }
0x17cb   :  { %v2890_v26 = vadd.f32 %v3663_v15, %v2024_v25  ;;  %v3069_v25 = vmov 0.0|0.0  }
0x17cc   :  { %3043 = vtanh.f32 %v2888_v24  ;;  %2827 = vmatprep.subr.bf16.mxu0 %v3069_v25 }
0x17cd   :  { %3045 = vtanh.f32 %v2890_v26  ;;  %v2352_v26 = vld [vmem:[%s3800_s7] sm:$0xff] }
0x17d6   :  { %v3044_v27 = vpop.eup %3043 }
0x17d7   :  { %v2037_v28 = vmul.f32 0.5, %v3044_v27  ;;  %v3046_v31 = vpop.eup %3045 }
0x17d8   :  { %v2039_v35 = vmul.f32 0.5, %v3046_v31 }
0x17d9   :  { %v2038_v30 = vadd.f32 0.5, %v2037_v28  ;;  %v2355_v28 = vld [vmem:[%s3800_s7 + $0x18] sm:$0xff] }
0x17da   :  { %v2040_v36 = vadd.f32 0.5, %v2039_v35 }
0x17db   :  { %v2042_v32 = vmul.f32 %v3046_v31, %v2038_v30  ;;  %v2041_v5 = vmul.f32 %v2038_v30, %v1947_v53  ;;  %v2356_v31 = vld [vmem:[%s3800_s7 + $0x20] sm:$0xff] }
0x17dd   :  { %2044 = vrot.lane.b32.xlu0 %v2042_v32, %s3068_s3  ;;  %v2357_v32 = vld [vmem:[%s3800_s7 + $0x28] sm:$0xff] }
0x184f   :  { %v2045_v6 = vpop.permute.xlu0 %2044 }
0x1850   :  { %v2047_v34 = vadd.f32 %v2045_v6, %v2041_v5  ;;  %v2834_v5 = vpack.c.bf16 %v2357_v32, %v2356_v31  ;;  %v2359_v6 = vld [vmem:[%s3800_s7 + $0x38] sm:$0xff] }
0x1852   :  { %3047 = vtanh.f32 %v2047_v34 }
0x185c   :  { %v3048_v37 = vpop.eup %3047 }
0x185d   :  { %v2049_v38 = vmul.f32 %v3048_v37, %v2040_v36 }
0x185f   :  { %2052 = vrot.lane.b32.xlu1 %v2049_v38, %s3068_s3  ;;  %v2050_v39 = vadd.f32 %v2049_v38, %v1950_v21 }
0x18d1   :  { %v2053_v42 = vpop.permute.xlu1 %2052 }
0x18d2   :  { %2490 = vmatmul.mubr.msk.f32.vlgmr.msra.gmra.mrb[10].mxu1 %vm377_vm2, %v2053_v42 }
0x18d3   :  { %2798 = vmatpush1.bf16.msra.mxu1 %v3572_v45  ;;  %2220 = vmatprep.mubr.f32.mxu1 %v3067_v3 }
0x18d4   :  { %2800 = vmatprep.subr.bf16.mxu1 %v3574_v48 }
0x18d7   :  { %2802 = vmatpush1.bf16.msra.mxu1 %v3591_v55 }
0x18d8   :  { %2804 = vmatprep.subr.bf16.mxu1 %v3594_v57 }
0x18db   :  { %2806 = vmatpush1.bf16.msra.mxu1 %v3611_v4 }
0x18dc   :  { %2808 = vmatprep.subr.bf16.mxu1 %v3614_v7 }
0x18df   :  { %2810 = vmatpush1.bf16.msra.mxu1 %v3625_v9 }
0x18e0   :  { %2812 = vmatprep.subr.bf16.mxu1 %v3547_v33 }
0x19a5   :  { %v2122_v43 = vpop.f32.mrb[10].mxu1 }
0x19a6   :  { %v2892_v44 = vadd.f32 %v3661_v40, %v2122_v43  ;;  %v2124_v49 = vpop.f32.mrb[11].mxu1 }
0x19a7   :  { %v2894_v50 = vadd.f32 %v3663_v15, %v2124_v49 }
0x19a8   :  { %3049 = vtanh.f32 %v2892_v44 }
0x19a9   :  { %3051 = vtanh.f32 %v2894_v50 }
0x19b2   :  { %v3050_v51 = vpop.eup %3049 }
0x19b3   :  { %v2137_v54 = vmul.f32 0.5, %v3050_v51  ;;  %v3052_v0 = vpop.eup %3051  ;;  %v2493_v51 = vld [vmem:[%s3801_s8] ss:$0 sm:$0xff] }
0x19b4   :  { %v2139_v33 = vmul.f32 0.5, %v3052_v0 }
0x19b5   :  { %v2138_v61 = vadd.f32 0.5, %v2137_v54 }
0x19b6   :  { %v2140_v10 = vadd.f32 0.5, %v2139_v33 }
0x19b7   :  { %v2142_v1 = vmul.f32 %v3052_v0, %v2138_v61  ;;  %v2141_v2 = vmul.f32 %v2138_v61, %v2047_v34 }
0x19b9   :  { %2144 = vrot.lane.b32.xlu0 %v2142_v1, %s3068_s3 }
0x1a2b   :  { %v2145_v29 = vpop.permute.xlu0 %2144 }
0x1a2c   :  { %v2147_v8 = vadd.f32 %v2145_v29, %v2141_v2 }
0x1a2e   :  { %3053 = vtanh.f32 %v2147_v8 }
0x1a38   :  { %v3054_v11 = vpop.eup %3053 }
0x1a39   :  { %v2149_v12 = vmul.f32 %v3054_v11, %v2140_v10 }
0x1a3b   :  { %2152 = vrot.lane.b32.xlu1 %v2149_v12, %s3068_s3  ;;  %v2150_v13 = vadd.f32 %v2149_v12, %v2050_v39 }
0x1aad   :  { %v2153_v14 = vpop.permute.xlu1 %2152 }
0x1aae   :  { %2491 = vmatmul.mubr.msk.f32.vlgmr.msra.gmra.mrb[12].mxu1 %vm377_vm2, %v2153_v14 }
0x1aaf   :  { %2814 = vmatpush1.bf16.msra.mxu1 %v3572_v45  ;;  %2320 = vmatprep.mubr.f32.mxu1 %v3067_v3  ;;  %v2358_v3 = vld [vmem:[%s3800_s7 + $0x30] sm:$0xff] }
0x1ab0   :  { %2816 = vmatprep.subr.bf16.mxu1 %v3574_v48  ;;  %v2837_v34 = vpack.c.bf16 %v2359_v6, %v2358_v3 }
0x1ab3   :  { %2818 = vmatpush1.bf16.msra.mxu1 %v3591_v55 }
0x1ab4   :  { %2820 = vmatprep.subr.bf16.mxu1 %v3594_v57 }
0x1ab7   :  { %2822 = vmatpush1.bf16.msra.mxu1 %v3611_v4 }
0x1ab8   :  { %2824 = vmatprep.subr.bf16.mxu1 %v3614_v7 }
0x1abb   :  { %2826 = vmatpush1.bf16.msra.mxu1 %v3625_v9 }
0x1b81   :  { %v2222_v41 = vpop.f32.mrb[12].mxu1 }
0x1b82   :  { %v2896_v16 = vadd.f32 %v3661_v40, %v2222_v41  ;;  %v2224_v46 = vpop.f32.mrb[13].mxu1 }
0x1b83   :  { %v2898_v45 = vadd.f32 %v3663_v15, %v2224_v46 }
0x1b84   :  { %3055 = vtanh.f32 %v2896_v16 }
0x1b85   :  { %3057 = vtanh.f32 %v2898_v45 }
0x1b8e   :  { %v3056_v59 = vpop.eup %3055 }
0x1b8f   :  { %v2237_v48 = vmul.f32 0.5, %v3056_v59  ;;  %v3058_v55 = vpop.eup %3057 }
0x1b90   :  { %v2239_v9 = vmul.f32 0.5, %v3058_v55 }
0x1b91   :  { %v2238_v17 = vadd.f32 0.5, %v2237_v48 }
0x1b92   :  { %v2240_v47 = vadd.f32 0.5, %v2239_v9 }
0x1b93   :  { %v2242_v60 = vmul.f32 %v3058_v55, %v2238_v17  ;;  %v2241_v57 = vmul.f32 %v2238_v17, %v2147_v8 }
0x1b95   :  { %2244 = vrot.lane.b32.xlu0 %v2242_v60, %s3068_s3 }
0x1c07   :  { %v2245_v4 = vpop.permute.xlu0 %2244 }
0x1c08   :  { %v2247_v7 = vadd.f32 %v2245_v4, %v2241_v57 }
0x1c0a   :  { %3059 = vtanh.f32 %v2247_v7 }
0x1c14   :  { %v3060_v52 = vpop.eup %3059 }
0x1c15   :  { %v2249_v62 = vmul.f32 %v3060_v52, %v2240_v47 }
0x1c17   :  { %2252 = vrot.lane.b32.xlu1 %v2249_v62, %s3068_s3  ;;  %v2250_v58 = vadd.f32 %v2249_v62, %v2150_v13 }
0x1c89   :  { %v2253_v63 = vpop.permute.xlu1 %2252 }
0x1c8a   :  { %2492 = vmatmul.mubr.msk.f32.vlgmr.msra.gmra.mrb[14].mxu1 %vm377_vm2, %v2253_v63 }
0x1d5d   :  { %v2322_v53 = vpop.f32.mrb[14].mxu1 }
0x1d5e   :  { %v2900_v56 = vadd.f32 %v3661_v40, %v2322_v53  ;;  %v2324_v18 = vpop.f32.mrb[15].mxu1  ;;  %v2353_v40 = vld [vmem:[%s3800_s7 + $0x8] sm:$0xff] }
0x1d5f   :  { %v2902_v19 = vadd.f32 %v3663_v15, %v2324_v18  ;;  %v2354_v15 = vld [vmem:[%s3800_s7 + $0x10] sm:$0xff]  ;;  %v2828_v27 = vpack.c.bf16 %v2353_v40, %v2352_v26 }
0x1d60   :  { %3061 = vtanh.f32 %v2900_v56  ;;  %v2831_v30 = vpack.c.bf16 %v2355_v28, %v2354_v15 }
0x1d61   :  { %3063 = vtanh.f32 %v2902_v19  ;;  %2829 = vmatpush3.bf16.msra.mxu0 %v2828_v27 }
0x1d62   :  { %2830 = vmatprep.subr.bf16.mxu0 %v3069_v25 }
0x1d65   :  { %2832 = vmatpush3.bf16.msra.mxu0 %v2831_v30 }
0x1d66   :  { %2833 = vmatprep.subr.bf16.mxu0 %v3069_v25 }
0x1d69   :  { %2835 = vmatpush3.bf16.msra.mxu0 %v2834_v5 }
0x1d6a   :  { %v3062_v20 = vpop.eup %3061  ;;  %2836 = vmatprep.subr.bf16.mxu0 %v3069_v25 }
0x1d6b   :  { %v2337_v21 = vmul.f32 0.5, %v3062_v20  ;;  %v3064_v23 = vpop.eup %3063 }
0x1d6c   :  { %v2339_v38 = vmul.f32 0.5, %v3064_v23 }
0x1d6d   :  { %v2338_v22 = vadd.f32 0.5, %v2337_v21  ;;  %2838 = vmatpush3.bf16.msra.mxu0 %v2837_v34 }
0x1d6e   :  { %v2340_v39 = vadd.f32 0.5, %v2339_v38 }
0x1d6f   :  { %v2342_v24 = vmul.f32 %v3064_v23, %v2338_v22  ;;  %v2341_v35 = vmul.f32 %v2338_v22, %v2247_v7 }
0x1d71   :  { %2344 = vrot.lane.b32.xlu0 %v2342_v24, %s3068_s3 }
0x1de3   :  { %v2345_v36 = vpop.permute.xlu0 %2344 }
0x1de4   :  { %v2347_v37 = vadd.f32 %v2345_v36, %v2341_v35 }
0x1de6   :  { %3065 = vtanh.f32 %v2347_v37 }
0x1df0   :  { %v3066_v42 = vpop.eup %3065 }
0x1df1   :  { %v2349_v43 = vmul.f32 %v3066_v42, %v2340_v39 }
0x1df3   :  { %v2350_v44 = vadd.f32 %v2349_v43, %v2250_v58 }
0x1df5   :  { %v2351_v49 = vmul.f32 0.125, %v2350_v44 }
0x1df7   :  { %2368 = vrot.lane.b32.xlu1 %v2351_v49, %s3068_s3 }
0x1e69   :  { %v2369_v50 = vpop.permute.xlu1 %2368 }
0x1e6a   :  { %2521 = vmatmul.mubr.msk.f32.vlgmr.msra.gmra.mrb[16].mxu0 %vm377_vm2, %v2369_v50 }
0x1f3d   :  { %v2438_v54 = vpop.f32.mrb[16].mxu0 }
0x1f3e   :  { %v2439_v61 = vadd.f32 %v2493_v51, %v2438_v54  ;;  %v2522_v0 = vpop.f32.mrb[17].mxu0 }
0x1f40   :  { %2442 = vst [vmem:[%s3802_s9] sm:$0xff] %v2439_v61 }

</bundles_post_ra>
